<compile_context>
chip_gen: v7x
topology: tpu7x:2x2x1
jax: 0.10.0
libtpu: 0.0.40
codegen_flags: <defaults>
</compile_context>

<pallas_src>
import numpy as np

import jax
import jax.numpy as jnp
from jax.experimental import pallas as pl
from jax.experimental.pallas import tpu as pltpu


# ----------------------- synthetic model config -----------------------
class _Cfg:
    self_info_len = 6
    self_info_dim = 16
    num_heads = 2
    rr_qkv_in_dim = 8
    rr_att_dim = 16
    ri_qkv_in_dim = 8
    ri_att_dim = 16


model_cfg = _Cfg()
CNN_OUT_DIM = 192          # 12 channels * 4 * 4 after two stride-2 convs
NEG_SLOPE = 0.01           # nn.LeakyReLU default

# Weight slab order passed to the kernel.
SLAB_NAMES = ("c1", "c2", "sp", "qkv", "m1", "s192")


# ----------------------- the single fused Pallas kernel -----------------------
def _fused_actor_kernel(pat_ref, self_ref, nb_ref, nbm_ref, it_ref, itm_ref,
                        c1_ref, c2_ref, sp_ref, qkv_ref, m1_ref, s192_ref,
                        out_ref):
    f32 = jnp.float32
    TB = self_ref.shape[0]
    H = model_cfg.num_heads

    def leaky(x):
        return jnp.where(x >= 0, x, NEG_SLOPE * x)

    def mxu(a, b):
        return jnp.dot(a, b, preferred_element_type=f32)

    # ---- FOV encoder ----
    # conv1: row-blocked im2col matmul on the MXU.
    #   pat rows = (b, ho), cols = (wo, ci, k);  output cols = (wo, co).
    a1 = leaky(mxu(pat_ref[...], c1_ref[0:288, :]) + c1_ref[288:289, :])   # (TB*8, 64)
    a1 = a1.reshape(TB, 8, 64)                                             # split leading dim only

    # conv2: dense bf16 lowering, consumed as 8 (TB,64)@(64,192) MXU matmuls,
    # one per conv1 output row ho; rows of c2 were permuted offline to match.
    acc = jnp.zeros((TB, 192), f32)
    for ho in range(8):
        acc = acc + jnp.dot(a1[:, ho, :].astype(jnp.bfloat16),
                            c2_ref[ho * 64:(ho + 1) * 64, :],
                            preferred_element_type=f32)
    grid_v = leaky(acc + s192_ref[0:1, :])                                 # (TB, 192)

    # ---- self encoder + q projections, fused into one matmul ----
    si = self_ref[...]                                                     # (TB, 6)
    sp_out = mxu(si, sp_ref[0:6, :]) + sp_ref[8:9, :]                      # (TB, 32)
    se1 = leaky(sp_out[:, 0:16])
    q_rr = sp_out[:, 16:24]          # project_rr_q (no activation)
    q_ri = sp_out[:, 24:32]          # project_ri_q (no activation)
    self_v = leaky(mxu(se1, sp_ref[16:32, 0:16]) + sp_ref[32:33, 0:16])    # (TB, 16)

    # ---- masked multi-head attention, folded straight into mlp1 segments ----
    # qkv fused into one (in, 3*att) matmul; wo/bo pre-multiplied into the
    # mlp1 row segments offline, so this returns the block's full mlp1
    # pre-activation contribution.
    def att_block(q2d, kv_ref, mask_ref, qkv_row0, m1_row0):
        att = qkv_ref.shape[1] // 3
        Dh = att // H
        N = mask_ref.shape[1]
        Din = kv_ref.shape[1]
        scale = 1.0 / float(Dh) ** 0.5

        wqkv = qkv_ref[qkv_row0:qkv_row0 + Din, :]                         # (Din, 3*att)
        bqkv = qkv_ref[qkv_row0 + 8:qkv_row0 + 9, :]                       # (1, 3*att)

        qp = mxu(q2d, wqkv[:, 0:att]) + bqkv[:, 0:att]                     # (TB, att)
        kvp = mxu(kv_ref[...], wqkv[:, att:3 * att]) + bqkv[:, att:3 * att]
        kv3 = kvp.reshape(TB, N, 2 * att)                                  # (TB, N, 2*att)
        mask3 = mask_ref[...][:, None, :]                                  # (TB, 1, N)

        # self_feats (= projected query) contribution to mlp1
        contrib = mxu(qp, m1_ref[m1_row0 + 16:m1_row0 + 32, :])            # (TB, 64)
        for h in range(H):
            qh = qp[:, None, h * Dh:(h + 1) * Dh]                          # (TB, 1, Dh)
            kh = kv3[:, :, h * Dh:(h + 1) * Dh]                            # (TB, N, Dh)
            vh = kv3[:, :, att + h * Dh:att + (h + 1) * Dh]                # (TB, N, Dh)

            sc = jnp.einsum("bqd,bkd->bqk", qh, kh,
                            preferred_element_type=f32) * scale            # (TB, 1, N)
            sc = jnp.where(mask3 > 0.5, sc, -1e9)                          # masked_fill
            sc = sc - jnp.max(sc, axis=-1, keepdims=True)
            e = jnp.exp(sc)
            p = e * pl.reciprocal(jnp.sum(e, axis=-1, keepdims=True),
                                  approx=True)                             # softmax
            oh = jnp.einsum("bqk,bkd->bqd", p, vh,
                            preferred_element_type=f32).reshape(TB, Dh)    # (TB, Dh)
            # attended head h -> (wo @ m1_att) rows for head h
            contrib = contrib + mxu(
                oh, m1_ref[m1_row0 + h * Dh:m1_row0 + (h + 1) * Dh, :])
        return contrib

    rr_c = att_block(q_rr, nb_ref, nbm_ref, qkv_row0=0, m1_row0=208)
    ri_c = att_block(q_ri, it_ref, itm_ref, qkv_row0=16, m1_row0=240)

    # ---- mlp1 (sum of pre-split row segments of the concat) + mlp2 ----
    h1 = (mxu(grid_v, m1_ref[0:192, :])
          + mxu(self_v, m1_ref[192:208, :])
          + rr_c + ri_c + m1_ref[272:273, :])
    h1 = leaky(h1)                                                         # (TB, 64)
    out = leaky(mxu(h1, s192_ref[8:72, :]) + s192_ref[72:73, :])           # (TB, 192)
    out_ref[...] = out.astype(out_ref.dtype)


# ----------------------- wrapper (one pallas_call per forward) -----------------------
def _im2col_rows(grid_map_f32):
    """(B,4,16,16) NCHW -> (B*8, 288) conv1 patch rows.
    Row index = b*8 + ho; column index = wo*36 + ci*9 + di*3 + dj."""
    B = grid_map_f32.shape[0]
    xp = jnp.pad(grid_map_f32, ((0, 0), (0, 0), (1, 1), (1, 1)))
    cols = []
    for di in range(3):
        for dj in range(3):
            cols.append(xp[:, :, di:di + 15:2, dj:dj + 15:2])   # (B, 4, 8, 8)
    pat = jnp.stack(cols, axis=2)                  # (B, ci, dij, ho, wo)
    pat = pat.transpose(0, 3, 4, 1, 2)             # (B, ho, wo, ci, dij)
    return pat.reshape(B * 8, 8 * 36)


def robot_actor_core_forward(fused, self_info, grid_map, neighbor_info,
                             neighbor_mask, inter_info, inter_mask):
    B = self_info.shape[0]
    S = self_info.shape[1]
    Nn, Dn = neighbor_info.shape[1], neighbor_info.shape[2]
    Ni, Di = inter_info.shape[1], inter_info.shape[2]

    # batch tile: full batch for small B, 256-row blocks (parallel grid) otherwise
    TB = B if B <= 256 else 256
    Bp = pl.cdiv(B, TB) * TB

    def pad_b(x):
        if Bp == B:
            return x
        return jnp.pad(x, [(0, Bp - B)] + [(0, 0)] * (x.ndim - 1))

    patches = _im2col_rows(pad_b(grid_map.astype(jnp.float32)))            # (Bp*8, 288)
    acts = [
        patches,
        pad_b(self_info.astype(jnp.float32)),                              # (Bp, S)
        pad_b(neighbor_info.astype(jnp.float32)).reshape(Bp * Nn, Dn),
        pad_b(neighbor_mask.astype(jnp.float32)),                          # (Bp, Nn)
        pad_b(inter_info.astype(jnp.float32)).reshape(Bp * Ni, Di),
        pad_b(inter_mask.astype(jnp.float32)),                             # (Bp, Ni)
    ]
    weights = [fused[name] for name in SLAB_NAMES]

    act_specs = [
        pl.BlockSpec((TB * 8, 288), lambda i: (i, 0)),
        pl.BlockSpec((TB, S), lambda i: (i, 0)),
        pl.BlockSpec((TB * Nn, Dn), lambda i: (i, 0)),
        pl.BlockSpec((TB, Nn), lambda i: (i, 0)),
        pl.BlockSpec((TB * Ni, Di), lambda i: (i, 0)),
        pl.BlockSpec((TB, Ni), lambda i: (i, 0)),
    ]
    w_specs = [pl.BlockSpec(w.shape, lambda i: (0, 0)) for w in weights]

    out = pl.pallas_call(
        _fused_actor_kernel,
        out_shape=jax.ShapeDtypeStruct((Bp, 192), jnp.float32),
        grid=(Bp // TB,),
        in_specs=act_specs + w_specs,
        out_specs=pl.BlockSpec((TB, 192), lambda i: (i, 0)),
        compiler_params=pltpu.CompilerParams(
            dimension_semantics=("parallel",)),
    )(*acts, *weights)
    return out[:B]


# ----------------------- parameter preparation (offline, once) -----------------------
def conv_to_dense(w, b, H, W, stride, pad):
    """Lower a Conv2d (OIHW weight) on an HxW NCHW input to a dense matmul:
    (Cin*H*W, Cout*Ho*Wo) weight + (Cout*Ho*Wo,) bias, NCHW flatten order."""
    w = np.asarray(w, np.float32)
    b = np.asarray(b, np.float32)
    Cout, Cin, K, _ = w.shape
    Ho = (H + 2 * pad - K) // stride + 1
    Wo = (W + 2 * pad - K) // stride + 1
    dense = np.zeros((Cin * H * W, Cout * Ho * Wo), np.float32)
    for co in range(Cout):
        for ho in range(Ho):
            for wo in range(Wo):
                col = (co * Ho + ho) * Wo + wo
                for ci in range(Cin):
                    for di in range(K):
                        hin = ho * stride + di - pad
                        if hin < 0 or hin >= H:
                            continue
                        for dj in range(K):
                            win = wo * stride + dj - pad
                            if win < 0 or win >= W:
                                continue
                            row = (ci * H + hin) * W + win
                            dense[row, col] = w[co, ci, di, dj]
    bias = np.repeat(b, Ho * Wo)
    return dense, bias


def prepare_fused_params(params):
    """Pack the torch-layout params into 6 pre-padded VMEM slabs."""
    H = model_cfg.num_heads
    npf = lambda x: np.asarray(x, np.float32)

    # --- c1 slab: row-blocked conv1 weight (288,64) + bias row ---
    c1mat = npf(params["fov"]["conv1_w"]).reshape(8, 36).T          # rows (ci,di,dj)
    W1_blk = np.zeros((288, 64), np.float32)
    for wo in range(8):
        W1_blk[wo * 36:(wo + 1) * 36, wo * 8:(wo + 1) * 8] = c1mat
    b1_row = np.tile(npf(params["fov"]["conv1_b"]), 8)              # idx wo*8+co
    c1_slab = np.concatenate([W1_blk, b1_row[None, :]], axis=0)     # (289, 64)

    # --- c2 slab: dense conv2 weight, rows permuted to the kernel's
    #     (hin, win*8+ci) activation order, stored bf16 ---
    wc2, bc2 = conv_to_dense(params["fov"]["conv2_w"], params["fov"]["conv2_b"], 8, 8, 2, 1)
    W2_perm = np.zeros((512, 192), np.float32)
    for hin in range(8):
        for win in range(8):
            for ci in range(8):
                W2_perm[hin * 64 + win * 8 + ci, :] = wc2[(ci * 8 + hin) * 8 + win, :]

    # --- sp slab: fused [wse1 | wprr | wpri], their biases, and wse2/bse2 ---
    sp_slab = np.zeros((40, 32), np.float32)
    sp_slab[0:6, :] = np.concatenate([npf(params["se1_w"]),
                                      npf(params["prr_w"]),
                                      npf(params["pri_w"])], axis=1)
    sp_slab[8, :] = np.concatenate([npf(params["se1_b"]),
                                    npf(params["prr_b"]),
                                    npf(params["pri_b"])])
    sp_slab[16:32, 0:16] = npf(params["se2_w"])
    sp_slab[32, 0:16] = npf(params["se2_b"])

    # --- qkv slab: fused (in, 3*att) qkv weights + bias rows for both blocks ---
    qkv_slab = np.zeros((32, 48), np.float32)

    def pack_qkv(p, row0):
        qkv_slab[row0:row0 + 8, 0:16] = npf(p["wq"])
        qkv_slab[row0:row0 + 8, 16:32] = npf(p["wk"])
        qkv_slab[row0:row0 + 8, 32:48] = npf(p["wv"])
        qkv_slab[row0 + 8, 0:16] = npf(p["bq"])
        qkv_slab[row0 + 8, 16:32] = npf(p["bk"])
        qkv_slab[row0 + 8, 32:48] = npf(p["bv"])

    pack_qkv(params["rr_att"], 0)
    pack_qkv(params["ri_att"], 16)

    # --- m1 slab: mlp1 rows split by the every_fea concat order, with each
    #     attention output projection (wo,bo) folded into its segment ---
    w1 = npf(params["mlp1_w"])
    b1 = npf(params["mlp1_b"])
    m1_grid = w1[0:192]
    m1_self = w1[192:208]
    m1_rr_att, m1_rr_self = w1[208:224], w1[224:240]
    m1_ri_att, m1_ri_self = w1[240:256], w1[256:272]
    rr_wo, rr_bo = npf(params["rr_att"]["wo"]), npf(params["rr_att"]["bo"])
    ri_wo, ri_bo = npf(params["ri_att"]["wo"]), npf(params["ri_att"]["bo"])
    b_fold = b1 + rr_bo @ m1_rr_att + ri_bo @ m1_ri_att
    m1_slab = np.concatenate([m1_grid, m1_self,
                              rr_wo @ m1_rr_att, m1_rr_self,
                              ri_wo @ m1_ri_att, m1_ri_self,
                              b_fold[None, :]], axis=0)              # (273, 64)

    # --- s192 slab: conv2 bias + mlp2 ---
    s192 = np.zeros((73, 192), np.float32)
    s192[0, :] = bc2
    s192[8:72, :] = npf(params["mlp2_w"])
    s192[72, :] = npf(params["mlp2_b"])

    return {
        "c1": jnp.asarray(c1_slab, jnp.float32),
        "c2": jnp.asarray(W2_perm, jnp.bfloat16),
        "sp": jnp.asarray(sp_slab, jnp.float32),
        "qkv": jnp.asarray(qkv_slab, jnp.float32),
        "m1": jnp.asarray(m1_slab, jnp.float32),
        "s192": jnp.asarray(s192, jnp.float32),
    }


# ----------------------- pure-JAX reference (for correctness check) -----------------------
def reference_forward(params, self_info, grid_map, nb_info, nb_mask, it_info, it_mask):
    def leaky(x):
        return jnp.where(x >= 0, x, NEG_SLOPE * x)

    def lin(x, w, b):
        return x @ w + b

    B = self_info.shape[0]

    def conv(x, w, b, stride, pad):
        y = jax.lax.conv_general_dilated(
            x, w, window_strides=(stride, stride), padding=[(pad, pad), (pad, pad)],
            dimension_numbers=("NCHW", "OIHW", "NCHW"))
        return y + b[None, :, None, None]

    h = leaky(conv(grid_map, params["fov"]["conv1_w"], params["fov"]["conv1_b"], 2, 1))
    h = leaky(conv(h, params["fov"]["conv2_w"], params["fov"]["conv2_b"], 2, 1))
    grid_v = h.reshape(B, -1)

    s = leaky(lin(self_info, params["se1_w"], params["se1_b"]))
    self_v = leaky(lin(s, params["se2_w"], params["se2_b"]))

    def mha(p, q2d, kv, mask, H, att):
        N, Din = kv.shape[1], kv.shape[2]
        Dh = att // H
        qp = lin(q2d, p["wq"], p["bq"])
        kp = lin(kv.reshape(B * N, Din), p["wk"], p["bk"]).reshape(B, N, H, Dh)
        vp = lin(kv.reshape(B * N, Din), p["wv"], p["bv"]).reshape(B, N, H, Dh)
        qh = qp.reshape(B, H, Dh)
        kh = kp.transpose(0, 2, 1, 3)
        vh = vp.transpose(0, 2, 1, 3)
        scale = 1.0 / float(Dh) ** 0.5
        sc = jnp.einsum("bhd,bhnd->bhn", qh, kh) * scale
        sc = jnp.where(mask[:, None, :] > 0.5, sc, -1e9)
        attn = jax.nn.softmax(sc, axis=-1)
        oh = jnp.einsum("bhn,bhnd->bhd", attn, vh).reshape(B, att)
        return lin(oh, p["wo"], p["bo"]), qp

    q_rr = lin(self_info, params["prr_w"], params["prr_b"])
    ally, self_a = mha(params["rr_att"], q_rr, nb_info, nb_mask,
                       model_cfg.num_heads, model_cfg.rr_att_dim)
    q_ri = lin(self_info, params["pri_w"], params["pri_b"])
    enemy, self_e = mha(params["ri_att"], q_ri, it_info, it_mask,
                        model_cfg.num_heads, model_cfg.ri_att_dim)

    every = jnp.concatenate([grid_v, self_v, ally, self_a, enemy, self_e], axis=-1)
    h1 = leaky(lin(every, params["mlp1_w"], params["mlp1_b"]))
    return leaky(lin(h1, params["mlp2_w"], params["mlp2_b"]))


# ----------------------- deterministic parameter init (torch layout) -----------------------
def _init_linear(key, in_dim, out_dim):
    k1, k2 = jax.random.split(key)
    bound = 1.0 / float(in_dim) ** 0.5
    w = jax.random.uniform(k1, (in_dim, out_dim), jnp.float32, -bound, bound)
    b = jax.random.uniform(k2, (out_dim,), jnp.float32, -bound, bound)
    return w, b


def _init_conv(key, cin, cout, ks):
    k1, k2 = jax.random.split(key)
    bound = 1.0 / float(cin * ks * ks) ** 0.5
    w = jax.random.uniform(k1, (cout, cin, ks, ks), jnp.float32, -bound, bound)
    b = jax.random.uniform(k2, (cout,), jnp.float32, -bound, bound)
    return w, b


def _init_mha(key, in_dim, att_dim):
    ks = jax.random.split(key, 4)
    p = {}
    p["wq"], p["bq"] = _init_linear(ks[0], in_dim, att_dim)
    p["wk"], p["bk"] = _init_linear(ks[1], in_dim, att_dim)
    p["wv"], p["bv"] = _init_linear(ks[2], in_dim, att_dim)
    p["wo"], p["bo"] = _init_linear(ks[3], att_dim, att_dim)
    return p


def init_params(key):
    keys = jax.random.split(key, 10)
    sil = model_cfg.self_info_len
    p = {}
    p["se1_w"], p["se1_b"] = _init_linear(keys[0], sil, 16)
    p["se2_w"], p["se2_b"] = _init_linear(keys[1], 16, model_cfg.self_info_dim)
    p["prr_w"], p["prr_b"] = _init_linear(keys[2], sil, model_cfg.rr_qkv_in_dim)
    p["pri_w"], p["pri_b"] = _init_linear(keys[3], sil, model_cfg.ri_qkv_in_dim)
    p["rr_att"] = _init_mha(keys[4], model_cfg.rr_qkv_in_dim, model_cfg.rr_att_dim)
    p["ri_att"] = _init_mha(keys[5], model_cfg.ri_qkv_in_dim, model_cfg.ri_att_dim)
    mlp_in = (CNN_OUT_DIM + model_cfg.self_info_dim
              + 2 * model_cfg.rr_att_dim + 2 * model_cfg.ri_att_dim)
    p["mlp1_w"], p["mlp1_b"] = _init_linear(keys[6], mlp_in, 64)
    p["mlp2_w"], p["mlp2_b"] = _init_linear(keys[7], 64, 192)
    fk = jax.random.split(keys[8], 2)
    c1w, c1b = _init_conv(fk[0], 4, 8, 3)
    c2w, c2b = _init_conv(fk[1], 8, 12, 3)
    p["fov"] = {"conv1_w": c1w, "conv1_b": c1b, "conv2_w": c2w, "conv2_b": c2b}
    return p


# ----------------------- demo -----------------------
if __name__ == "__main__":
    key = jax.random.PRNGKey(0)
    ks = jax.random.split(key, 6)
    B, Nn, Ni = 2, 8, 8
    self_info = jax.random.normal(ks[0], (B, model_cfg.self_info_len), jnp.float32)
    grid_map = jax.random.normal(ks[1], (B, 4, 16, 16), jnp.float32)
    neighbor_info = jax.random.normal(ks[2], (B, Nn, model_cfg.rr_qkv_in_dim), jnp.float32)
    neighbor_mask = (jax.random.uniform(ks[3], (B, Nn)) > 0.3).astype(jnp.float32)
    inter_info = jax.random.normal(ks[4], (B, Ni, model_cfg.ri_qkv_in_dim), jnp.float32)
    inter_mask = (jax.random.uniform(ks[5], (B, Ni)) > 0.3).astype(jnp.float32)

    params = init_params(jax.random.PRNGKey(1))
    fused = prepare_fused_params(params)

    fwd = jax.jit(robot_actor_core_forward)
    out = jax.block_until_ready(
        fwd(fused, self_info, grid_map, neighbor_info, neighbor_mask,
            inter_info, inter_mask))

    assert out.shape == (B, 192), out.shape
    assert bool(jnp.all(jnp.isfinite(out)))

    ref = reference_forward(params, self_info, grid_map, neighbor_info,
                            neighbor_mask, inter_info, inter_mask)
    err = float(jnp.max(jnp.abs(out - ref)))
    assert err < 5e-2, f"mismatch vs pure-JAX reference: max abs err {err}"

    print("KERNEL_OK")
</pallas_src>

<mosaic_0001>
module attributes {stable_mosaic.version = 11 : i64} {
  func.func @_fused_actor_kernel(%arg0: i32, %arg1: memref<16x288xf32, #tpu.memory_space<vmem>>, %arg2: memref<2x6xf32, #tpu.memory_space<vmem>>, %arg3: memref<16x8xf32, #tpu.memory_space<vmem>>, %arg4: memref<2x8xf32, #tpu.memory_space<vmem>>, %arg5: memref<16x8xf32, #tpu.memory_space<vmem>>, %arg6: memref<2x8xf32, #tpu.memory_space<vmem>>, %arg7: memref<289x64xf32, #tpu.memory_space<vmem>>, %arg8: memref<512x192xbf16, #tpu.memory_space<vmem>>, %arg9: memref<40x32xf32, #tpu.memory_space<vmem>>, %arg10: memref<32x48xf32, #tpu.memory_space<vmem>>, %arg11: memref<273x64xf32, #tpu.memory_space<vmem>>, %arg12: memref<73x192xf32, #tpu.memory_space<vmem>>, %arg13: memref<2x192xf32, #tpu.memory_space<vmem>>) attributes {dimension_semantics = [#tpu.dimension_semantics<parallel>], iteration_bounds = array<i64: 1>, scalar_prefetch = 0 : i64, scratch_operands = 0 : i64, tpu.core_type = #tpu.core_type<tc>, window_params = [{transform_indices = @transform_0, window_bounds = array<i64: 16, 288>}, {transform_indices = @transform_1, window_bounds = array<i64: 2, 6>}, {transform_indices = @transform_2, window_bounds = array<i64: 16, 8>}, {transform_indices = @transform_3, window_bounds = array<i64: 2, 8>}, {transform_indices = @transform_4, window_bounds = array<i64: 16, 8>}, {transform_indices = @transform_5, window_bounds = array<i64: 2, 8>}, {pipeline_mode = #tpu.pipeline_mode<synchronous>, transform_indices = @transform_6, window_bounds = array<i64: 289, 64>}, {pipeline_mode = #tpu.pipeline_mode<synchronous>, transform_indices = @transform_7, window_bounds = array<i64: 512, 192>}, {pipeline_mode = #tpu.pipeline_mode<synchronous>, transform_indices = @transform_8, window_bounds = array<i64: 40, 32>}, {pipeline_mode = #tpu.pipeline_mode<synchronous>, transform_indices = @transform_9, window_bounds = array<i64: 32, 48>}, {pipeline_mode = #tpu.pipeline_mode<synchronous>, transform_indices = @transform_10, window_bounds = array<i64: 273, 64>}, {pipeline_mode = #tpu.pipeline_mode<synchronous>, transform_indices = @transform_11, window_bounds = array<i64: 73, 192>}, {transform_indices = @transform_12, window_bounds = array<i64: 2, 192>}]} {
    %c0 = arith.constant 0 : index
    %c0_0 = arith.constant 0 : index
    %0 = vector.load %arg1[%c0, %c0_0] : memref<16x288xf32, #tpu.memory_space<vmem>>, vector<16x288xf32>
    %c0_1 = arith.constant 0 : index
    %c0_2 = arith.constant 0 : index
    %1 = vector.load %arg7[%c0_1, %c0_2] : memref<289x64xf32, #tpu.memory_space<vmem>>, vector<288x64xf32>
    %cst = arith.constant dense<0.000000e+00> : vector<16x64xf32>
    %2 = tpu.matmul %0, %1, %cst {dimension_numbers = #tpu.dot_dimension_numbers<[1], [0], [0], [1], [0, 0, 1, 1], [], []>} : vector<16x288xf32>, vector<288x64xf32>, vector<16x64xf32> -> vector<16x64xf32>
    %c288 = arith.constant 288 : index
    %c0_3 = arith.constant 0 : index
    %3 = vector.load %arg7[%c288, %c0_3] : memref<289x64xf32, #tpu.memory_space<vmem>>, vector<1x64xf32>
    %4 = vector.broadcast %3 : vector<1x64xf32> to vector<16x64xf32>
    %5 = arith.addf %2, %4 : vector<16x64xf32>
    %cst_4 = arith.constant 0.000000e+00 : f32
    %6 = vector.broadcast %cst_4 : f32 to vector<16x64xf32>
    %7 = arith.cmpf oge, %5, %6 : vector<16x64xf32>
    %cst_5 = arith.constant 0.00999999977 : f32
    %8 = vector.broadcast %cst_5 : f32 to vector<16x64xf32>
    %9 = arith.mulf %8, %5 : vector<16x64xf32>
    %10 = arith.select %7, %5, %9 : vector<16x64xi1>, vector<16x64xf32>
    %11 = vector.shape_cast %10 : vector<16x64xf32> to vector<2x8x64xf32>
    %cst_6 = arith.constant 0.000000e+00 : f32
    %12 = vector.broadcast %cst_6 : f32 to vector<2x192xf32>
    %13 = vector.extract_strided_slice %11 {offsets = [0, 0, 0], sizes = [2, 1, 64], strides = [1, 1, 1]} : vector<2x8x64xf32> to vector<2x1x64xf32>
    %14 = vector.shape_cast %13 : vector<2x1x64xf32> to vector<2x64xf32>
    %15 = arith.truncf %14 : vector<2x64xf32> to vector<2x64xbf16>
    %c0_7 = arith.constant 0 : index
    %c0_8 = arith.constant 0 : index
    %16 = vector.load %arg8[%c0_7, %c0_8] : memref<512x192xbf16, #tpu.memory_space<vmem>>, vector<64x192xbf16>
    %cst_9 = arith.constant dense<0.000000e+00> : vector<2x192xf32>
    %17 = tpu.matmul %15, %16, %cst_9 {dimension_numbers = #tpu.dot_dimension_numbers<[1], [0], [0], [1], [0, 0, 1, 1], [], []>} : vector<2x64xbf16>, vector<64x192xbf16>, vector<2x192xf32> -> vector<2x192xf32>
    %18 = arith.addf %12, %17 : vector<2x192xf32>
    %19 = vector.extract_strided_slice %11 {offsets = [0, 1, 0], sizes = [2, 1, 64], strides = [1, 1, 1]} : vector<2x8x64xf32> to vector<2x1x64xf32>
    %20 = vector.shape_cast %19 : vector<2x1x64xf32> to vector<2x64xf32>
    %21 = arith.truncf %20 : vector<2x64xf32> to vector<2x64xbf16>
    %c64 = arith.constant 64 : index
    %c0_10 = arith.constant 0 : index
    %22 = vector.load %arg8[%c64, %c0_10] : memref<512x192xbf16, #tpu.memory_space<vmem>>, vector<64x192xbf16>
    %cst_11 = arith.constant dense<0.000000e+00> : vector<2x192xf32>
    %23 = tpu.matmul %21, %22, %cst_11 {dimension_numbers = #tpu.dot_dimension_numbers<[1], [0], [0], [1], [0, 0, 1, 1], [], []>} : vector<2x64xbf16>, vector<64x192xbf16>, vector<2x192xf32> -> vector<2x192xf32>
    %24 = arith.addf %18, %23 : vector<2x192xf32>
    %25 = vector.extract_strided_slice %11 {offsets = [0, 2, 0], sizes = [2, 1, 64], strides = [1, 1, 1]} : vector<2x8x64xf32> to vector<2x1x64xf32>
    %26 = vector.shape_cast %25 : vector<2x1x64xf32> to vector<2x64xf32>
    %27 = arith.truncf %26 : vector<2x64xf32> to vector<2x64xbf16>
    %c128 = arith.constant 128 : index
    %c0_12 = arith.constant 0 : index
    %28 = vector.load %arg8[%c128, %c0_12] : memref<512x192xbf16, #tpu.memory_space<vmem>>, vector<64x192xbf16>
    %cst_13 = arith.constant dense<0.000000e+00> : vector<2x192xf32>
    %29 = tpu.matmul %27, %28, %cst_13 {dimension_numbers = #tpu.dot_dimension_numbers<[1], [0], [0], [1], [0, 0, 1, 1], [], []>} : vector<2x64xbf16>, vector<64x192xbf16>, vector<2x192xf32> -> vector<2x192xf32>
    %30 = arith.addf %24, %29 : vector<2x192xf32>
    %31 = vector.extract_strided_slice %11 {offsets = [0, 3, 0], sizes = [2, 1, 64], strides = [1, 1, 1]} : vector<2x8x64xf32> to vector<2x1x64xf32>
    %32 = vector.shape_cast %31 : vector<2x1x64xf32> to vector<2x64xf32>
    %33 = arith.truncf %32 : vector<2x64xf32> to vector<2x64xbf16>
    %c192 = arith.constant 192 : index
    %c0_14 = arith.constant 0 : index
    %34 = vector.load %arg8[%c192, %c0_14] : memref<512x192xbf16, #tpu.memory_space<vmem>>, vector<64x192xbf16>
    %cst_15 = arith.constant dense<0.000000e+00> : vector<2x192xf32>
    %35 = tpu.matmul %33, %34, %cst_15 {dimension_numbers = #tpu.dot_dimension_numbers<[1], [0], [0], [1], [0, 0, 1, 1], [], []>} : vector<2x64xbf16>, vector<64x192xbf16>, vector<2x192xf32> -> vector<2x192xf32>
    %36 = arith.addf %30, %35 : vector<2x192xf32>
    %37 = vector.extract_strided_slice %11 {offsets = [0, 4, 0], sizes = [2, 1, 64], strides = [1, 1, 1]} : vector<2x8x64xf32> to vector<2x1x64xf32>
    %38 = vector.shape_cast %37 : vector<2x1x64xf32> to vector<2x64xf32>
    %39 = arith.truncf %38 : vector<2x64xf32> to vector<2x64xbf16>
    %c256 = arith.constant 256 : index
    %c0_16 = arith.constant 0 : index
    %40 = vector.load %arg8[%c256, %c0_16] : memref<512x192xbf16, #tpu.memory_space<vmem>>, vector<64x192xbf16>
    %cst_17 = arith.constant dense<0.000000e+00> : vector<2x192xf32>
    %41 = tpu.matmul %39, %40, %cst_17 {dimension_numbers = #tpu.dot_dimension_numbers<[1], [0], [0], [1], [0, 0, 1, 1], [], []>} : vector<2x64xbf16>, vector<64x192xbf16>, vector<2x192xf32> -> vector<2x192xf32>
    %42 = arith.addf %36, %41 : vector<2x192xf32>
    %43 = vector.extract_strided_slice %11 {offsets = [0, 5, 0], sizes = [2, 1, 64], strides = [1, 1, 1]} : vector<2x8x64xf32> to vector<2x1x64xf32>
    %44 = vector.shape_cast %43 : vector<2x1x64xf32> to vector<2x64xf32>
    %45 = arith.truncf %44 : vector<2x64xf32> to vector<2x64xbf16>
    %c320 = arith.constant 320 : index
    %c0_18 = arith.constant 0 : index
    %46 = vector.load %arg8[%c320, %c0_18] : memref<512x192xbf16, #tpu.memory_space<vmem>>, vector<64x192xbf16>
    %cst_19 = arith.constant dense<0.000000e+00> : vector<2x192xf32>
    %47 = tpu.matmul %45, %46, %cst_19 {dimension_numbers = #tpu.dot_dimension_numbers<[1], [0], [0], [1], [0, 0, 1, 1], [], []>} : vector<2x64xbf16>, vector<64x192xbf16>, vector<2x192xf32> -> vector<2x192xf32>
    %48 = arith.addf %42, %47 : vector<2x192xf32>
    %49 = vector.extract_strided_slice %11 {offsets = [0, 6, 0], sizes = [2, 1, 64], strides = [1, 1, 1]} : vector<2x8x64xf32> to vector<2x1x64xf32>
    %50 = vector.shape_cast %49 : vector<2x1x64xf32> to vector<2x64xf32>
    %51 = arith.truncf %50 : vector<2x64xf32> to vector<2x64xbf16>
    %c384 = arith.constant 384 : index
    %c0_20 = arith.constant 0 : index
    %52 = vector.load %arg8[%c384, %c0_20] : memref<512x192xbf16, #tpu.memory_space<vmem>>, vector<64x192xbf16>
    %cst_21 = arith.constant dense<0.000000e+00> : vector<2x192xf32>
    %53 = tpu.matmul %51, %52, %cst_21 {dimension_numbers = #tpu.dot_dimension_numbers<[1], [0], [0], [1], [0, 0, 1, 1], [], []>} : vector<2x64xbf16>, vector<64x192xbf16>, vector<2x192xf32> -> vector<2x192xf32>
    %54 = arith.addf %48, %53 : vector<2x192xf32>
    %55 = vector.extract_strided_slice %11 {offsets = [0, 7, 0], sizes = [2, 1, 64], strides = [1, 1, 1]} : vector<2x8x64xf32> to vector<2x1x64xf32>
    %56 = vector.shape_cast %55 : vector<2x1x64xf32> to vector<2x64xf32>
    %57 = arith.truncf %56 : vector<2x64xf32> to vector<2x64xbf16>
    %c448 = arith.constant 448 : index
    %c0_22 = arith.constant 0 : index
    %58 = vector.load %arg8[%c448, %c0_22] : memref<512x192xbf16, #tpu.memory_space<vmem>>, vector<64x192xbf16>
    %cst_23 = arith.constant dense<0.000000e+00> : vector<2x192xf32>
    %59 = tpu.matmul %57, %58, %cst_23 {dimension_numbers = #tpu.dot_dimension_numbers<[1], [0], [0], [1], [0, 0, 1, 1], [], []>} : vector<2x64xbf16>, vector<64x192xbf16>, vector<2x192xf32> -> vector<2x192xf32>
    %60 = arith.addf %54, %59 : vector<2x192xf32>
    %c0_24 = arith.constant 0 : index
    %c0_25 = arith.constant 0 : index
    %61 = vector.load %arg12[%c0_24, %c0_25] : memref<73x192xf32, #tpu.memory_space<vmem>>, vector<1x192xf32>
    %62 = vector.broadcast %61 : vector<1x192xf32> to vector<2x192xf32>
    %63 = arith.addf %60, %62 : vector<2x192xf32>
    %cst_26 = arith.constant 0.000000e+00 : f32
    %64 = vector.broadcast %cst_26 : f32 to vector<2x192xf32>
    %65 = arith.cmpf oge, %63, %64 : vector<2x192xf32>
    %cst_27 = arith.constant 0.00999999977 : f32
    %66 = vector.broadcast %cst_27 : f32 to vector<2x192xf32>
    %67 = arith.mulf %66, %63 : vector<2x192xf32>
    %68 = arith.select %65, %63, %67 : vector<2x192xi1>, vector<2x192xf32>
    %c0_28 = arith.constant 0 : index
    %c0_29 = arith.constant 0 : index
    %69 = vector.load %arg2[%c0_28, %c0_29] : memref<2x6xf32, #tpu.memory_space<vmem>>, vector<2x6xf32>
    %c0_30 = arith.constant 0 : index
    %c0_31 = arith.constant 0 : index
    %70 = vector.load %arg9[%c0_30, %c0_31] : memref<40x32xf32, #tpu.memory_space<vmem>>, vector<6x32xf32>
    %cst_32 = arith.constant dense<0.000000e+00> : vector<2x32xf32>
    %71 = tpu.matmul %69, %70, %cst_32 {dimension_numbers = #tpu.dot_dimension_numbers<[1], [0], [0], [1], [0, 0, 1, 1], [], []>} : vector<2x6xf32>, vector<6x32xf32>, vector<2x32xf32> -> vector<2x32xf32>
    %c8 = arith.constant 8 : index
    %c0_33 = arith.constant 0 : index
    %72 = vector.load %arg9[%c8, %c0_33] : memref<40x32xf32, #tpu.memory_space<vmem>>, vector<1x32xf32>
    %73 = vector.broadcast %72 : vector<1x32xf32> to vector<2x32xf32>
    %74 = arith.addf %71, %73 : vector<2x32xf32>
    %75 = vector.extract_strided_slice %74 {offsets = [0, 0], sizes = [2, 16], strides = [1, 1]} : vector<2x32xf32> to vector<2x16xf32>
    %cst_34 = arith.constant 0.000000e+00 : f32
    %76 = vector.broadcast %cst_34 : f32 to vector<2x16xf32>
    %77 = arith.cmpf oge, %75, %76 : vector<2x16xf32>
    %cst_35 = arith.constant 0.00999999977 : f32
    %78 = vector.broadcast %cst_35 : f32 to vector<2x16xf32>
    %79 = arith.mulf %78, %75 : vector<2x16xf32>
    %80 = arith.select %77, %75, %79 : vector<2x16xi1>, vector<2x16xf32>
    %81 = vector.extract_strided_slice %74 {offsets = [0, 16], sizes = [2, 8], strides = [1, 1]} : vector<2x32xf32> to vector<2x8xf32>
    %82 = vector.extract_strided_slice %74 {offsets = [0, 24], sizes = [2, 8], strides = [1, 1]} : vector<2x32xf32> to vector<2x8xf32>
    %c16 = arith.constant 16 : index
    %c0_36 = arith.constant 0 : index
    %83 = vector.load %arg9[%c16, %c0_36] : memref<40x32xf32, #tpu.memory_space<vmem>>, vector<16x16xf32>
    %cst_37 = arith.constant dense<0.000000e+00> : vector<2x16xf32>
    %84 = tpu.matmul %80, %83, %cst_37 {dimension_numbers = #tpu.dot_dimension_numbers<[1], [0], [0], [1], [0, 0, 1, 1], [], []>} : vector<2x16xf32>, vector<16x16xf32>, vector<2x16xf32> -> vector<2x16xf32>
    %c32 = arith.constant 32 : index
    %c0_38 = arith.constant 0 : index
    %85 = vector.load %arg9[%c32, %c0_38] : memref<40x32xf32, #tpu.memory_space<vmem>>, vector<1x16xf32>
    %86 = vector.broadcast %85 : vector<1x16xf32> to vector<2x16xf32>
    %87 = arith.addf %84, %86 : vector<2x16xf32>
    %cst_39 = arith.constant 0.000000e+00 : f32
    %88 = vector.broadcast %cst_39 : f32 to vector<2x16xf32>
    %89 = arith.cmpf oge, %87, %88 : vector<2x16xf32>
    %cst_40 = arith.constant 0.00999999977 : f32
    %90 = vector.broadcast %cst_40 : f32 to vector<2x16xf32>
    %91 = arith.mulf %90, %87 : vector<2x16xf32>
    %92 = arith.select %89, %87, %91 : vector<2x16xi1>, vector<2x16xf32>
    %c0_41 = arith.constant 0 : index
    %c0_42 = arith.constant 0 : index
    %93 = vector.load %arg10[%c0_41, %c0_42] : memref<32x48xf32, #tpu.memory_space<vmem>>, vector<8x48xf32>
    %c8_43 = arith.constant 8 : index
    %c0_44 = arith.constant 0 : index
    %94 = vector.load %arg10[%c8_43, %c0_44] : memref<32x48xf32, #tpu.memory_space<vmem>>, vector<1x48xf32>
    %95 = vector.extract_strided_slice %93 {offsets = [0, 0], sizes = [8, 16], strides = [1, 1]} : vector<8x48xf32> to vector<8x16xf32>
    %cst_45 = arith.constant dense<0.000000e+00> : vector<2x16xf32>
    %96 = tpu.matmul %81, %95, %cst_45 {dimension_numbers = #tpu.dot_dimension_numbers<[1], [0], [0], [1], [0, 0, 1, 1], [], []>} : vector<2x8xf32>, vector<8x16xf32>, vector<2x16xf32> -> vector<2x16xf32>
    %97 = vector.extract_strided_slice %94 {offsets = [0, 0], sizes = [1, 16], strides = [1, 1]} : vector<1x48xf32> to vector<1x16xf32>
    %98 = vector.broadcast %97 : vector<1x16xf32> to vector<2x16xf32>
    %99 = arith.addf %96, %98 : vector<2x16xf32>
    %c0_46 = arith.constant 0 : index
    %c0_47 = arith.constant 0 : index
    %100 = vector.load %arg3[%c0_46, %c0_47] : memref<16x8xf32, #tpu.memory_space<vmem>>, vector<16x8xf32>
    %101 = vector.extract_strided_slice %93 {offsets = [0, 16], sizes = [8, 32], strides = [1, 1]} : vector<8x48xf32> to vector<8x32xf32>
    %cst_48 = arith.constant dense<0.000000e+00> : vector<16x32xf32>
    %102 = tpu.matmul %100, %101, %cst_48 {dimension_numbers = #tpu.dot_dimension_numbers<[1], [0], [0], [1], [0, 0, 1, 1], [], []>} : vector<16x8xf32>, vector<8x32xf32>, vector<16x32xf32> -> vector<16x32xf32>
    %103 = vector.extract_strided_slice %94 {offsets = [0, 16], sizes = [1, 32], strides = [1, 1]} : vector<1x48xf32> to vector<1x32xf32>
    %104 = vector.broadcast %103 : vector<1x32xf32> to vector<16x32xf32>
    %105 = arith.addf %102, %104 : vector<16x32xf32>
    %106 = vector.shape_cast %105 : vector<16x32xf32> to vector<2x8x32xf32>
    %c0_49 = arith.constant 0 : index
    %c0_50 = arith.constant 0 : index
    %107 = vector.load %arg4[%c0_49, %c0_50] : memref<2x8xf32, #tpu.memory_space<vmem>>, vector<2x8xf32>
    %108 = vector.shape_cast %107 : vector<2x8xf32> to vector<2x1x8xf32>
    %c224 = arith.constant 224 : index
    %c0_51 = arith.constant 0 : index
    %109 = vector.load %arg11[%c224, %c0_51] : memref<273x64xf32, #tpu.memory_space<vmem>>, vector<16x64xf32>
    %cst_52 = arith.constant dense<0.000000e+00> : vector<2x64xf32>
    %110 = tpu.matmul %99, %109, %cst_52 {dimension_numbers = #tpu.dot_dimension_numbers<[1], [0], [0], [1], [0, 0, 1, 1], [], []>} : vector<2x16xf32>, vector<16x64xf32>, vector<2x64xf32> -> vector<2x64xf32>
    %111 = vector.extract_strided_slice %99 {offsets = [0, 0], sizes = [2, 8], strides = [1, 1]} : vector<2x16xf32> to vector<2x8xf32>
    %112 = vector.shape_cast %111 : vector<2x8xf32> to vector<2x1x8xf32>
    %113 = vector.extract_strided_slice %106 {offsets = [0, 0, 0], sizes = [2, 8, 8], strides = [1, 1, 1]} : vector<2x8x32xf32> to vector<2x8x8xf32>
    %114 = vector.extract_strided_slice %106 {offsets = [0, 0, 16], sizes = [2, 8, 8], strides = [1, 1, 1]} : vector<2x8x32xf32> to vector<2x8x8xf32>
    "tpu.trace_start"() <{level = 10 : i32, message = "bqd,bkd->bqk"}> : () -> ()
    %cst_53 = arith.constant dense<0.000000e+00> : vector<2x1x8xf32>
    %115 = tpu.matmul %112, %113, %cst_53 {dimension_numbers = #tpu.dot_dimension_numbers<[2], [2], [1], [1], [0, 0, 0, 1, 1, 1], [0], [0]>} : vector<2x1x8xf32>, vector<2x8x8xf32>, vector<2x1x8xf32> -> vector<2x1x8xf32>
    "tpu.trace_stop"() : () -> ()
    %cst_54 = arith.constant 0.353553385 : f32
    %116 = vector.broadcast %cst_54 : f32 to vector<2x1x8xf32>
    %117 = arith.mulf %115, %116 : vector<2x1x8xf32>
    %cst_55 = arith.constant 5.000000e-01 : f32
    %118 = vector.broadcast %cst_55 : f32 to vector<2x1x8xf32>
    %119 = arith.cmpf ogt, %108, %118 : vector<2x1x8xf32>
    %cst_56 = arith.constant -1.000000e+09 : f32
    %120 = vector.broadcast %cst_56 : f32 to vector<2x1x8xf32>
    %121 = arith.select %119, %117, %120 : vector<2x1x8xi1>, vector<2x1x8xf32>
    %cst_57 = arith.constant dense<0xFF800000> : vector<2x1xf32>
    %122 = vector.multi_reduction <maximumf>, %121, %cst_57 [2] : vector<2x1x8xf32> to vector<2x1xf32>
    %123 = vector.shape_cast %122 : vector<2x1xf32> to vector<2x1x1xf32>
    %124 = vector.broadcast %123 : vector<2x1x1xf32> to vector<2x1x8xf32>
    %125 = arith.subf %121, %124 : vector<2x1x8xf32>
    %126 = math.exp %125 : vector<2x1x8xf32>
    %cst_58 = arith.constant dense<0.000000e+00> : vector<2x1xf32>
    %127 = vector.multi_reduction <add>, %126, %cst_58 [2] : vector<2x1x8xf32> to vector<2x1xf32>
    %128 = vector.shape_cast %127 : vector<2x1xf32> to vector<2x1x1xf32>
    %129 = tpu.reciprocal %128 {approx = true} : vector<2x1x1xf32> -> vector<2x1x1xf32>
    %130 = vector.broadcast %129 : vector<2x1x1xf32> to vector<2x1x8xf32>
    %131 = arith.mulf %126, %130 : vector<2x1x8xf32>
    "tpu.trace_start"() <{level = 10 : i32, message = "bqk,bkd->bqd"}> : () -> ()
    %cst_59 = arith.constant dense<0.000000e+00> : vector<2x1x8xf32>
    %132 = tpu.matmul %131, %114, %cst_59 {dimension_numbers = #tpu.dot_dimension_numbers<[2], [1], [1], [2], [0, 0, 0, 1, 1, 2], [0], [0]>} : vector<2x1x8xf32>, vector<2x8x8xf32>, vector<2x1x8xf32> -> vector<2x1x8xf32>
    "tpu.trace_stop"() : () -> ()
    %133 = vector.shape_cast %132 : vector<2x1x8xf32> to vector<2x8xf32>
    %c208 = arith.constant 208 : index
    %c0_60 = arith.constant 0 : index
    %134 = vector.load %arg11[%c208, %c0_60] : memref<273x64xf32, #tpu.memory_space<vmem>>, vector<8x64xf32>
    %cst_61 = arith.constant dense<0.000000e+00> : vector<2x64xf32>
    %135 = tpu.matmul %133, %134, %cst_61 {dimension_numbers = #tpu.dot_dimension_numbers<[1], [0], [0], [1], [0, 0, 1, 1], [], []>} : vector<2x8xf32>, vector<8x64xf32>, vector<2x64xf32> -> vector<2x64xf32>
    %136 = arith.addf %110, %135 : vector<2x64xf32>
    %137 = vector.extract_strided_slice %99 {offsets = [0, 8], sizes = [2, 8], strides = [1, 1]} : vector<2x16xf32> to vector<2x8xf32>
    %138 = vector.shape_cast %137 : vector<2x8xf32> to vector<2x1x8xf32>
    %139 = vector.extract_strided_slice %106 {offsets = [0, 0, 8], sizes = [2, 8, 8], strides = [1, 1, 1]} : vector<2x8x32xf32> to vector<2x8x8xf32>
    %140 = vector.extract_strided_slice %106 {offsets = [0, 0, 24], sizes = [2, 8, 8], strides = [1, 1, 1]} : vector<2x8x32xf32> to vector<2x8x8xf32>
    "tpu.trace_start"() <{level = 10 : i32, message = "bqd,bkd->bqk"}> : () -> ()
    %cst_62 = arith.constant dense<0.000000e+00> : vector<2x1x8xf32>
    %141 = tpu.matmul %138, %139, %cst_62 {dimension_numbers = #tpu.dot_dimension_numbers<[2], [2], [1], [1], [0, 0, 0, 1, 1, 1], [0], [0]>} : vector<2x1x8xf32>, vector<2x8x8xf32>, vector<2x1x8xf32> -> vector<2x1x8xf32>
    "tpu.trace_stop"() : () -> ()
    %cst_63 = arith.constant 0.353553385 : f32
    %142 = vector.broadcast %cst_63 : f32 to vector<2x1x8xf32>
    %143 = arith.mulf %141, %142 : vector<2x1x8xf32>
    %cst_64 = arith.constant 5.000000e-01 : f32
    %144 = vector.broadcast %cst_64 : f32 to vector<2x1x8xf32>
    %145 = arith.cmpf ogt, %108, %144 : vector<2x1x8xf32>
    %cst_65 = arith.constant -1.000000e+09 : f32
    %146 = vector.broadcast %cst_65 : f32 to vector<2x1x8xf32>
    %147 = arith.select %145, %143, %146 : vector<2x1x8xi1>, vector<2x1x8xf32>
    %cst_66 = arith.constant dense<0xFF800000> : vector<2x1xf32>
    %148 = vector.multi_reduction <maximumf>, %147, %cst_66 [2] : vector<2x1x8xf32> to vector<2x1xf32>
    %149 = vector.shape_cast %148 : vector<2x1xf32> to vector<2x1x1xf32>
    %150 = vector.broadcast %149 : vector<2x1x1xf32> to vector<2x1x8xf32>
    %151 = arith.subf %147, %150 : vector<2x1x8xf32>
    %152 = math.exp %151 : vector<2x1x8xf32>
    %cst_67 = arith.constant dense<0.000000e+00> : vector<2x1xf32>
    %153 = vector.multi_reduction <add>, %152, %cst_67 [2] : vector<2x1x8xf32> to vector<2x1xf32>
    %154 = vector.shape_cast %153 : vector<2x1xf32> to vector<2x1x1xf32>
    %155 = tpu.reciprocal %154 {approx = true} : vector<2x1x1xf32> -> vector<2x1x1xf32>
    %156 = vector.broadcast %155 : vector<2x1x1xf32> to vector<2x1x8xf32>
    %157 = arith.mulf %152, %156 : vector<2x1x8xf32>
    "tpu.trace_start"() <{level = 10 : i32, message = "bqk,bkd->bqd"}> : () -> ()
    %cst_68 = arith.constant dense<0.000000e+00> : vector<2x1x8xf32>
    %158 = tpu.matmul %157, %140, %cst_68 {dimension_numbers = #tpu.dot_dimension_numbers<[2], [1], [1], [2], [0, 0, 0, 1, 1, 2], [0], [0]>} : vector<2x1x8xf32>, vector<2x8x8xf32>, vector<2x1x8xf32> -> vector<2x1x8xf32>
    "tpu.trace_stop"() : () -> ()
    %159 = vector.shape_cast %158 : vector<2x1x8xf32> to vector<2x8xf32>
    %c216 = arith.constant 216 : index
    %c0_69 = arith.constant 0 : index
    %160 = vector.load %arg11[%c216, %c0_69] : memref<273x64xf32, #tpu.memory_space<vmem>>, vector<8x64xf32>
    %cst_70 = arith.constant dense<0.000000e+00> : vector<2x64xf32>
    %161 = tpu.matmul %159, %160, %cst_70 {dimension_numbers = #tpu.dot_dimension_numbers<[1], [0], [0], [1], [0, 0, 1, 1], [], []>} : vector<2x8xf32>, vector<8x64xf32>, vector<2x64xf32> -> vector<2x64xf32>
    %162 = arith.addf %136, %161 : vector<2x64xf32>
    %c16_71 = arith.constant 16 : index
    %c0_72 = arith.constant 0 : index
    %163 = vector.load %arg10[%c16_71, %c0_72] : memref<32x48xf32, #tpu.memory_space<vmem>>, vector<8x48xf32>
    %c24 = arith.constant 24 : index
    %c0_73 = arith.constant 0 : index
    %164 = vector.load %arg10[%c24, %c0_73] : memref<32x48xf32, #tpu.memory_space<vmem>>, vector<1x48xf32>
    %165 = vector.extract_strided_slice %163 {offsets = [0, 0], sizes = [8, 16], strides = [1, 1]} : vector<8x48xf32> to vector<8x16xf32>
    %cst_74 = arith.constant dense<0.000000e+00> : vector<2x16xf32>
    %166 = tpu.matmul %82, %165, %cst_74 {dimension_numbers = #tpu.dot_dimension_numbers<[1], [0], [0], [1], [0, 0, 1, 1], [], []>} : vector<2x8xf32>, vector<8x16xf32>, vector<2x16xf32> -> vector<2x16xf32>
    %167 = vector.extract_strided_slice %164 {offsets = [0, 0], sizes = [1, 16], strides = [1, 1]} : vector<1x48xf32> to vector<1x16xf32>
    %168 = vector.broadcast %167 : vector<1x16xf32> to vector<2x16xf32>
    %169 = arith.addf %166, %168 : vector<2x16xf32>
    %c0_75 = arith.constant 0 : index
    %c0_76 = arith.constant 0 : index
    %170 = vector.load %arg5[%c0_75, %c0_76] : memref<16x8xf32, #tpu.memory_space<vmem>>, vector<16x8xf32>
    %171 = vector.extract_strided_slice %163 {offsets = [0, 16], sizes = [8, 32], strides = [1, 1]} : vector<8x48xf32> to vector<8x32xf32>
    %cst_77 = arith.constant dense<0.000000e+00> : vector<16x32xf32>
    %172 = tpu.matmul %170, %171, %cst_77 {dimension_numbers = #tpu.dot_dimension_numbers<[1], [0], [0], [1], [0, 0, 1, 1], [], []>} : vector<16x8xf32>, vector<8x32xf32>, vector<16x32xf32> -> vector<16x32xf32>
    %173 = vector.extract_strided_slice %164 {offsets = [0, 16], sizes = [1, 32], strides = [1, 1]} : vector<1x48xf32> to vector<1x32xf32>
    %174 = vector.broadcast %173 : vector<1x32xf32> to vector<16x32xf32>
    %175 = arith.addf %172, %174 : vector<16x32xf32>
    %176 = vector.shape_cast %175 : vector<16x32xf32> to vector<2x8x32xf32>
    %c0_78 = arith.constant 0 : index
    %c0_79 = arith.constant 0 : index
    %177 = vector.load %arg6[%c0_78, %c0_79] : memref<2x8xf32, #tpu.memory_space<vmem>>, vector<2x8xf32>
    %178 = vector.shape_cast %177 : vector<2x8xf32> to vector<2x1x8xf32>
    %c256_80 = arith.constant 256 : index
    %c0_81 = arith.constant 0 : index
    %179 = vector.load %arg11[%c256_80, %c0_81] : memref<273x64xf32, #tpu.memory_space<vmem>>, vector<16x64xf32>
    %cst_82 = arith.constant dense<0.000000e+00> : vector<2x64xf32>
    %180 = tpu.matmul %169, %179, %cst_82 {dimension_numbers = #tpu.dot_dimension_numbers<[1], [0], [0], [1], [0, 0, 1, 1], [], []>} : vector<2x16xf32>, vector<16x64xf32>, vector<2x64xf32> -> vector<2x64xf32>
    %181 = vector.extract_strided_slice %169 {offsets = [0, 0], sizes = [2, 8], strides = [1, 1]} : vector<2x16xf32> to vector<2x8xf32>
    %182 = vector.shape_cast %181 : vector<2x8xf32> to vector<2x1x8xf32>
    %183 = vector.extract_strided_slice %176 {offsets = [0, 0, 0], sizes = [2, 8, 8], strides = [1, 1, 1]} : vector<2x8x32xf32> to vector<2x8x8xf32>
    %184 = vector.extract_strided_slice %176 {offsets = [0, 0, 16], sizes = [2, 8, 8], strides = [1, 1, 1]} : vector<2x8x32xf32> to vector<2x8x8xf32>
    "tpu.trace_start"() <{level = 10 : i32, message = "bqd,bkd->bqk"}> : () -> ()
    %cst_83 = arith.constant dense<0.000000e+00> : vector<2x1x8xf32>
    %185 = tpu.matmul %182, %183, %cst_83 {dimension_numbers = #tpu.dot_dimension_numbers<[2], [2], [1], [1], [0, 0, 0, 1, 1, 1], [0], [0]>} : vector<2x1x8xf32>, vector<2x8x8xf32>, vector<2x1x8xf32> -> vector<2x1x8xf32>
    "tpu.trace_stop"() : () -> ()
    %cst_84 = arith.constant 0.353553385 : f32
    %186 = vector.broadcast %cst_84 : f32 to vector<2x1x8xf32>
    %187 = arith.mulf %185, %186 : vector<2x1x8xf32>
    %cst_85 = arith.constant 5.000000e-01 : f32
    %188 = vector.broadcast %cst_85 : f32 to vector<2x1x8xf32>
    %189 = arith.cmpf ogt, %178, %188 : vector<2x1x8xf32>
    %cst_86 = arith.constant -1.000000e+09 : f32
    %190 = vector.broadcast %cst_86 : f32 to vector<2x1x8xf32>
    %191 = arith.select %189, %187, %190 : vector<2x1x8xi1>, vector<2x1x8xf32>
    %cst_87 = arith.constant dense<0xFF800000> : vector<2x1xf32>
    %192 = vector.multi_reduction <maximumf>, %191, %cst_87 [2] : vector<2x1x8xf32> to vector<2x1xf32>
    %193 = vector.shape_cast %192 : vector<2x1xf32> to vector<2x1x1xf32>
    %194 = vector.broadcast %193 : vector<2x1x1xf32> to vector<2x1x8xf32>
    %195 = arith.subf %191, %194 : vector<2x1x8xf32>
    %196 = math.exp %195 : vector<2x1x8xf32>
    %cst_88 = arith.constant dense<0.000000e+00> : vector<2x1xf32>
    %197 = vector.multi_reduction <add>, %196, %cst_88 [2] : vector<2x1x8xf32> to vector<2x1xf32>
    %198 = vector.shape_cast %197 : vector<2x1xf32> to vector<2x1x1xf32>
    %199 = tpu.reciprocal %198 {approx = true} : vector<2x1x1xf32> -> vector<2x1x1xf32>
    %200 = vector.broadcast %199 : vector<2x1x1xf32> to vector<2x1x8xf32>
    %201 = arith.mulf %196, %200 : vector<2x1x8xf32>
    "tpu.trace_start"() <{level = 10 : i32, message = "bqk,bkd->bqd"}> : () -> ()
    %cst_89 = arith.constant dense<0.000000e+00> : vector<2x1x8xf32>
    %202 = tpu.matmul %201, %184, %cst_89 {dimension_numbers = #tpu.dot_dimension_numbers<[2], [1], [1], [2], [0, 0, 0, 1, 1, 2], [0], [0]>} : vector<2x1x8xf32>, vector<2x8x8xf32>, vector<2x1x8xf32> -> vector<2x1x8xf32>
    "tpu.trace_stop"() : () -> ()
    %203 = vector.shape_cast %202 : vector<2x1x8xf32> to vector<2x8xf32>
    %c240 = arith.constant 240 : index
    %c0_90 = arith.constant 0 : index
    %204 = vector.load %arg11[%c240, %c0_90] : memref<273x64xf32, #tpu.memory_space<vmem>>, vector<8x64xf32>
    %cst_91 = arith.constant dense<0.000000e+00> : vector<2x64xf32>
    %205 = tpu.matmul %203, %204, %cst_91 {dimension_numbers = #tpu.dot_dimension_numbers<[1], [0], [0], [1], [0, 0, 1, 1], [], []>} : vector<2x8xf32>, vector<8x64xf32>, vector<2x64xf32> -> vector<2x64xf32>
    %206 = arith.addf %180, %205 : vector<2x64xf32>
    %207 = vector.extract_strided_slice %169 {offsets = [0, 8], sizes = [2, 8], strides = [1, 1]} : vector<2x16xf32> to vector<2x8xf32>
    %208 = vector.shape_cast %207 : vector<2x8xf32> to vector<2x1x8xf32>
    %209 = vector.extract_strided_slice %176 {offsets = [0, 0, 8], sizes = [2, 8, 8], strides = [1, 1, 1]} : vector<2x8x32xf32> to vector<2x8x8xf32>
    %210 = vector.extract_strided_slice %176 {offsets = [0, 0, 24], sizes = [2, 8, 8], strides = [1, 1, 1]} : vector<2x8x32xf32> to vector<2x8x8xf32>
    "tpu.trace_start"() <{level = 10 : i32, message = "bqd,bkd->bqk"}> : () -> ()
    %cst_92 = arith.constant dense<0.000000e+00> : vector<2x1x8xf32>
    %211 = tpu.matmul %208, %209, %cst_92 {dimension_numbers = #tpu.dot_dimension_numbers<[2], [2], [1], [1], [0, 0, 0, 1, 1, 1], [0], [0]>} : vector<2x1x8xf32>, vector<2x8x8xf32>, vector<2x1x8xf32> -> vector<2x1x8xf32>
    "tpu.trace_stop"() : () -> ()
    %cst_93 = arith.constant 0.353553385 : f32
    %212 = vector.broadcast %cst_93 : f32 to vector<2x1x8xf32>
    %213 = arith.mulf %211, %212 : vector<2x1x8xf32>
    %cst_94 = arith.constant 5.000000e-01 : f32
    %214 = vector.broadcast %cst_94 : f32 to vector<2x1x8xf32>
    %215 = arith.cmpf ogt, %178, %214 : vector<2x1x8xf32>
    %cst_95 = arith.constant -1.000000e+09 : f32
    %216 = vector.broadcast %cst_95 : f32 to vector<2x1x8xf32>
    %217 = arith.select %215, %213, %216 : vector<2x1x8xi1>, vector<2x1x8xf32>
    %cst_96 = arith.constant dense<0xFF800000> : vector<2x1xf32>
    %218 = vector.multi_reduction <maximumf>, %217, %cst_96 [2] : vector<2x1x8xf32> to vector<2x1xf32>
    %219 = vector.shape_cast %218 : vector<2x1xf32> to vector<2x1x1xf32>
    %220 = vector.broadcast %219 : vector<2x1x1xf32> to vector<2x1x8xf32>
    %221 = arith.subf %217, %220 : vector<2x1x8xf32>
    %222 = math.exp %221 : vector<2x1x8xf32>
    %cst_97 = arith.constant dense<0.000000e+00> : vector<2x1xf32>
    %223 = vector.multi_reduction <add>, %222, %cst_97 [2] : vector<2x1x8xf32> to vector<2x1xf32>
    %224 = vector.shape_cast %223 : vector<2x1xf32> to vector<2x1x1xf32>
    %225 = tpu.reciprocal %224 {approx = true} : vector<2x1x1xf32> -> vector<2x1x1xf32>
    %226 = vector.broadcast %225 : vector<2x1x1xf32> to vector<2x1x8xf32>
    %227 = arith.mulf %222, %226 : vector<2x1x8xf32>
    "tpu.trace_start"() <{level = 10 : i32, message = "bqk,bkd->bqd"}> : () -> ()
    %cst_98 = arith.constant dense<0.000000e+00> : vector<2x1x8xf32>
    %228 = tpu.matmul %227, %210, %cst_98 {dimension_numbers = #tpu.dot_dimension_numbers<[2], [1], [1], [2], [0, 0, 0, 1, 1, 2], [0], [0]>} : vector<2x1x8xf32>, vector<2x8x8xf32>, vector<2x1x8xf32> -> vector<2x1x8xf32>
    "tpu.trace_stop"() : () -> ()
    %229 = vector.shape_cast %228 : vector<2x1x8xf32> to vector<2x8xf32>
    %c248 = arith.constant 248 : index
    %c0_99 = arith.constant 0 : index
    %230 = vector.load %arg11[%c248, %c0_99] : memref<273x64xf32, #tpu.memory_space<vmem>>, vector<8x64xf32>
    %cst_100 = arith.constant dense<0.000000e+00> : vector<2x64xf32>
    %231 = tpu.matmul %229, %230, %cst_100 {dimension_numbers = #tpu.dot_dimension_numbers<[1], [0], [0], [1], [0, 0, 1, 1], [], []>} : vector<2x8xf32>, vector<8x64xf32>, vector<2x64xf32> -> vector<2x64xf32>
    %232 = arith.addf %206, %231 : vector<2x64xf32>
    %c0_101 = arith.constant 0 : index
    %c0_102 = arith.constant 0 : index
    %233 = vector.load %arg11[%c0_101, %c0_102] : memref<273x64xf32, #tpu.memory_space<vmem>>, vector<192x64xf32>
    %cst_103 = arith.constant dense<0.000000e+00> : vector<2x64xf32>
    %234 = tpu.matmul %68, %233, %cst_103 {dimension_numbers = #tpu.dot_dimension_numbers<[1], [0], [0], [1], [0, 0, 1, 1], [], []>} : vector<2x192xf32>, vector<192x64xf32>, vector<2x64xf32> -> vector<2x64xf32>
    %c192_104 = arith.constant 192 : index
    %c0_105 = arith.constant 0 : index
    %235 = vector.load %arg11[%c192_104, %c0_105] : memref<273x64xf32, #tpu.memory_space<vmem>>, vector<16x64xf32>
    %cst_106 = arith.constant dense<0.000000e+00> : vector<2x64xf32>
    %236 = tpu.matmul %92, %235, %cst_106 {dimension_numbers = #tpu.dot_dimension_numbers<[1], [0], [0], [1], [0, 0, 1, 1], [], []>} : vector<2x16xf32>, vector<16x64xf32>, vector<2x64xf32> -> vector<2x64xf32>
    %237 = arith.addf %234, %236 : vector<2x64xf32>
    %238 = arith.addf %237, %162 : vector<2x64xf32>
    %239 = arith.addf %238, %232 : vector<2x64xf32>
    %c272 = arith.constant 272 : index
    %c0_107 = arith.constant 0 : index
    %240 = vector.load %arg11[%c272, %c0_107] : memref<273x64xf32, #tpu.memory_space<vmem>>, vector<1x64xf32>
    %241 = vector.broadcast %240 : vector<1x64xf32> to vector<2x64xf32>
    %242 = arith.addf %239, %241 : vector<2x64xf32>
    %cst_108 = arith.constant 0.000000e+00 : f32
    %243 = vector.broadcast %cst_108 : f32 to vector<2x64xf32>
    %244 = arith.cmpf oge, %242, %243 : vector<2x64xf32>
    %cst_109 = arith.constant 0.00999999977 : f32
    %245 = vector.broadcast %cst_109 : f32 to vector<2x64xf32>
    %246 = arith.mulf %245, %242 : vector<2x64xf32>
    %247 = arith.select %244, %242, %246 : vector<2x64xi1>, vector<2x64xf32>
    %c8_110 = arith.constant 8 : index
    %c0_111 = arith.constant 0 : index
    %248 = vector.load %arg12[%c8_110, %c0_111] : memref<73x192xf32, #tpu.memory_space<vmem>>, vector<64x192xf32>
    %cst_112 = arith.constant dense<0.000000e+00> : vector<2x192xf32>
    %249 = tpu.matmul %247, %248, %cst_112 {dimension_numbers = #tpu.dot_dimension_numbers<[1], [0], [0], [1], [0, 0, 1, 1], [], []>} : vector<2x64xf32>, vector<64x192xf32>, vector<2x192xf32> -> vector<2x192xf32>
    %c72 = arith.constant 72 : index
    %c0_113 = arith.constant 0 : index
    %250 = vector.load %arg12[%c72, %c0_113] : memref<73x192xf32, #tpu.memory_space<vmem>>, vector<1x192xf32>
    %251 = vector.broadcast %250 : vector<1x192xf32> to vector<2x192xf32>
    %252 = arith.addf %249, %251 : vector<2x192xf32>
    %cst_114 = arith.constant 0.000000e+00 : f32
    %253 = vector.broadcast %cst_114 : f32 to vector<2x192xf32>
    %254 = arith.cmpf oge, %252, %253 : vector<2x192xf32>
    %cst_115 = arith.constant 0.00999999977 : f32
    %255 = vector.broadcast %cst_115 : f32 to vector<2x192xf32>
    %256 = arith.mulf %255, %252 : vector<2x192xf32>
    %257 = arith.select %254, %252, %256 : vector<2x192xi1>, vector<2x192xf32>
    %c0_116 = arith.constant 0 : index
    %c0_117 = arith.constant 0 : index
    %258 = vector.load %arg13[%c0_116, %c0_117] : memref<2x192xf32, #tpu.memory_space<vmem>>, vector<2x192xf32>
    tpu.vector_store %arg13[%c0_116, %c0_117], %257 {strides = array<i32>} : memref<2x192xf32, #tpu.memory_space<vmem>>, vector<2x192xf32>,
    return
  }
  func.func @transform_0(%arg0: i32) -> (i32, i32) {
    %c0_i32 = arith.constant 0 : i32
    %c0_i32_0 = arith.constant 0 : i32
    return %arg0, %c0_i32 : i32, i32
  }
  func.func @transform_1(%arg0: i32) -> (i32, i32) {
    %c0_i32 = arith.constant 0 : i32
    %c0_i32_0 = arith.constant 0 : i32
    return %arg0, %c0_i32 : i32, i32
  }
  func.func @transform_2(%arg0: i32) -> (i32, i32) {
    %c0_i32 = arith.constant 0 : i32
    %c0_i32_0 = arith.constant 0 : i32
    return %arg0, %c0_i32 : i32, i32
  }
  func.func @transform_3(%arg0: i32) -> (i32, i32) {
    %c0_i32 = arith.constant 0 : i32
    %c0_i32_0 = arith.constant 0 : i32
    return %arg0, %c0_i32 : i32, i32
  }
  func.func @transform_4(%arg0: i32) -> (i32, i32) {
    %c0_i32 = arith.constant 0 : i32
    %c0_i32_0 = arith.constant 0 : i32
    return %arg0, %c0_i32 : i32, i32
  }
  func.func @transform_5(%arg0: i32) -> (i32, i32) {
    %c0_i32 = arith.constant 0 : i32
    %c0_i32_0 = arith.constant 0 : i32
    return %arg0, %c0_i32 : i32, i32
  }
  func.func @transform_6(%arg0: i32) -> (i32, i32) {
    %c0_i32 = arith.constant 0 : i32
    %c0_i32_0 = arith.constant 0 : i32
    %c0_i32_1 = arith.constant 0 : i32
    return %c0_i32, %c0_i32_0 : i32, i32
  }
  func.func @transform_7(%arg0: i32) -> (i32, i32) {
    %c0_i32 = arith.constant 0 : i32
    %c0_i32_0 = arith.constant 0 : i32
    %c0_i32_1 = arith.constant 0 : i32
    return %c0_i32, %c0_i32_0 : i32, i32
  }
  func.func @transform_8(%arg0: i32) -> (i32, i32) {
    %c0_i32 = arith.constant 0 : i32
    %c0_i32_0 = arith.constant 0 : i32
    %c0_i32_1 = arith.constant 0 : i32
    return %c0_i32, %c0_i32_0 : i32, i32
  }
  func.func @transform_9(%arg0: i32) -> (i32, i32) {
    %c0_i32 = arith.constant 0 : i32
    %c0_i32_0 = arith.constant 0 : i32
    %c0_i32_1 = arith.constant 0 : i32
    return %c0_i32, %c0_i32_0 : i32, i32
  }
  func.func @transform_10(%arg0: i32) -> (i32, i32) {
    %c0_i32 = arith.constant 0 : i32
    %c0_i32_0 = arith.constant 0 : i32
    %c0_i32_1 = arith.constant 0 : i32
    return %c0_i32, %c0_i32_0 : i32, i32
  }
  func.func @transform_11(%arg0: i32) -> (i32, i32) {
    %c0_i32 = arith.constant 0 : i32
    %c0_i32_0 = arith.constant 0 : i32
    %c0_i32_1 = arith.constant 0 : i32
    return %c0_i32, %c0_i32_0 : i32, i32
  }
  func.func @transform_12(%arg0: i32) -> (i32, i32) {
    %c0_i32 = arith.constant 0 : i32
    %c0_i32_0 = arith.constant 0 : i32
    return %arg0, %c0_i32 : i32, i32
  }
}

</mosaic_0001>

<bundles_post_ra>
// kernel: robot_actor_core_forward.1
= control target key start
LH: loop header
LB: loop body
LE: loop exit
PB: predicated region body
PF: predicated region fallthrough
CT: control target
= control target key end

     0   :  { %vm90_vm0 = vcmask 261120   ;;  %s5417_s0 = inlined_call_operand.vmem [shape: f32[16,288], index: 0, kind: input, shape index: {}]   ;;  %s5418_s1 = inlined_call_operand.vmem [shape: f32[2,6], index: 1, kind: input, shape index: {}]   ;;  %s5419_s2 = inlined_call_operand.vmem [shape: f32[16,8], index: 2, kind: input, shape index: {}]   ;;  %s5420_s3 = inlined_call_operand.vmem [shape: f32[2,8], index: 3, kind: input, shape index: {}]   ;;  %s5421_s4 = inlined_call_operand.vmem [shape: f32[16,8], index: 4, kind: input, shape index: {}]   ;;  %s5422_s5 = inlined_call_operand.vmem [shape: f32[2,8], index: 5, kind: input, shape index: {}]   ;;  %s5423_s6 = inlined_call_operand.vmem [shape: f32[289,64], index: 6, kind: input, shape index: {}]   ;;  %s5424_s7 = inlined_call_operand.vmem [shape: bf16[512,192], index: 7, kind: input, shape index: {}]   ;;  %s5425_s8 = inlined_call_operand.vmem [shape: f32[40,32], index: 8, kind: input, shape index: {}]   ;;  %s5426_s9 = inlined_call_operand.vmem [shape: f32[32,48], index: 9, kind: input, shape index: {}]   ;;  %s5427_s10 = inlined_call_operand.vmem [shape: f32[273,64], index: 10, kind: input, shape index: {}]   ;;  %s5428_s11 = inlined_call_operand.vmem [shape: f32[73,192], index: 11, kind: input, shape index: {}]   ;;  %s5429_s12 = inlined_call_operand.hbm [shape: f32[2,192], index: 12, kind: output, shape index: {}]  }
   0x1   :  { %v65_v0 = vld [vmem:[%s5423_s6 + $0x80] sm:$0xff]  ;;  %v66_v1 = vld [vmem:[%s5423_s6 + $0x88] sm:$0xff]  ;;  %v67_v5 = vld [vmem:[%s5423_s6 + $0x90] sm:$0xff] }
   0x2   :  { %v49_v2 = vld [vmem:[%s5423_s6] sm:$0xff]  ;;  %v4194_v3 = vpack.c.bf16 %v66_v1, %v65_v0  ;;  %v50_v4 = vld [vmem:[%s5423_s6 + $0x8] sm:$0xff]  ;;  %v68_v6 = vld [vmem:[%s5423_s6 + $0x98] sm:$0xff] }
   0x3   :  { %v4196_v7 = vpack.c.bf16 %v50_v4, %v49_v2  ;;  %v4198_v8 = vpack.c.bf16 %v68_v6, %v67_v5  ;;  %v51_v9 = vld [vmem:[%s5423_s6 + $0x10] sm:$0xff]  ;;  %v52_v10 = vld [vmem:[%s5423_s6 + $0x18] sm:$0xff]  ;;  %v69_v11 = vld [vmem:[%s5423_s6 + $0xa0] sm:$0xff] }
   0x4   :  { %4195 = vmatprep.subr.bf16.mxu0 %v4194_v3  ;;  %v70_v12 = vld [vmem:[%s5423_s6 + $0xa8] sm:$0xff]  ;;  %v4200_v13 = vpack.c.bf16 %v52_v10, %v51_v9  ;;  %v53_v15 = vld [vmem:[%s5423_s6 + $0x20] sm:$0xff]  ;;  %v71_v17 = vld [vmem:[%s5423_s6 + $0xb0] sm:$0xff] }
   0x5   :  { %4197 = vmatpush3.bf16.msra.mxu0 %v4196_v7  ;;  %v4202_v14 = vpack.c.bf16 %v70_v12, %v69_v11  ;;  %v54_v16 = vld [vmem:[%s5423_s6 + $0x28] sm:$0xff]  ;;  %v72_v18 = vld [vmem:[%s5423_s6 + $0xb8] sm:$0xff]  ;;  %v55_v21 = vld [vmem:[%s5423_s6 + $0x30] sm:$0xff] }
   0x6   :  { %4199 = vmatprep.subr.bf16.mxu0 %v4198_v8  ;;  %v4204_v19 = vpack.c.bf16 %v54_v16, %v53_v15  ;;  %v4206_v20 = vpack.c.bf16 %v72_v18, %v71_v17  ;;  %v56_v22 = vld [vmem:[%s5423_s6 + $0x38] sm:$0xff]  ;;  %v73_v23 = vld [vmem:[%s5423_s6 + $0xc0] sm:$0xff]  ;;  %v74_v24 = vld [vmem:[%s5423_s6 + $0xc8] sm:$0xff] }
   0x7   :  { %v81_v25 = vld [vmem:[%s5423_s6 + $0x100] sm:$0xff]  ;;  %v82_v26 = vld [vmem:[%s5423_s6 + $0x108] sm:$0xff]  ;;  %v4208_v30 = vpack.c.bf16 %v56_v22, %v55_v21  ;;  %v83_v32 = vld [vmem:[%s5423_s6 + $0x110] sm:$0xff]  ;;  %v4210_v34 = vpack.c.bf16 %v74_v24, %v73_v23 }
   0x8   :  { %v57_v27 = vld [vmem:[%s5423_s6 + $0x40] sm:$0xff]  ;;  %v4226_v28 = vpack.c.bf16 %v82_v26, %v81_v25  ;;  %v44_v29 = vld [vmem:[%s5417_s0 + $0x8] sm:$0xff]  ;;  %v84_v33 = vld [vmem:[%s5423_s6 + $0x118] sm:$0xff] }
   0x9   :  { %4201 = vmatpush3.bf16.msra.mxu0 %v4200_v13  ;;  %v58_v31 = vld [vmem:[%s5423_s6 + $0x48] sm:$0xff]  ;;  %161 = vmatprep.mubr.f32.mxu0 %v44_v29  ;;  %v75_v35 = vld [vmem:[%s5423_s6 + $0xd0] sm:$0xff]  ;;  %v76_v36 = vld [vmem:[%s5423_s6 + $0xd8] sm:$0xff]  ;;  %v4230_v37 = vpack.c.bf16 %v84_v33, %v83_v32 }
   0xa   :  { %4203 = vmatprep.subr.bf16.mxu0 %v4202_v14  ;;  %4227 = vmatprep.subr.bf16.mxu1 %v4226_v28  ;;  %v45_v38 = vld [vmem:[%s5417_s0 + $0x10] sm:$0xff]  ;;  %v60_v40 = vld [vmem:[%s5423_s6 + $0x58] sm:$0xff]  ;;  %v4212_v41 = vpack.c.bf16 %v58_v31, %v57_v27  ;;  %v77_v42 = vld [vmem:[%s5423_s6 + $0xe0] sm:$0xff]  ;;  %v4214_v45 = vpack.c.bf16 %v76_v36, %v75_v35 }
   0xb   :  { %4229 = vmatpush3.bf16.msra.mxu1 %v4226_v28  ;;  %4038 = vmatprep.mubr.msk.f32.mxu1 %vm90_vm0, %v45_v38  ;;  %v59_v39 = vld [vmem:[%s5423_s6 + $0x50] sm:$0xff]  ;;  %v78_v43 = vld [vmem:[%s5423_s6 + $0xe8] sm:$0xff]  ;;  %v61_v46 = vld [vmem:[%s5423_s6 + $0x60] sm:$0xff] }
   0xc   :  { %4231 = vmatprep.subr.bf16.mxu1 %v4230_v37  ;;  %v48_v44 = vld [vmem:[%s5417_s0 + $0x28] sm:$0xff]  ;;  %v4216_v48 = vpack.c.bf16 %v60_v40, %v59_v39  ;;  %v79_v49 = vld [vmem:[%s5423_s6 + $0xf0] sm:$0xff]  ;;  %v80_v50 = vld [vmem:[%s5423_s6 + $0xf8] sm:$0xff]  ;;  %v4218_v51 = vpack.c.bf16 %v78_v43, %v77_v42 }
   0xd   :  { %4205 = vmatpush3.bf16.msra.mxu0 %v4204_v19  ;;  %v62_v47 = vld [vmem:[%s5423_s6 + $0x68] sm:$0xff]  ;;  %v63_v52 = vld [vmem:[%s5423_s6 + $0x70] sm:$0xff]  ;;  %v64_v53 = vld [vmem:[%s5423_s6 + $0x78] sm:$0xff]  ;;  %v4222_v55 = vpack.c.bf16 %v80_v50, %v79_v49 }
   0xe   :  { %4207 = vmatprep.subr.bf16.mxu0 %v4206_v20  ;;  %v4220_v54 = vpack.c.bf16 %v62_v47, %v61_v46  ;;  %v4224_v56 = vpack.c.bf16 %v64_v53, %v63_v52  ;;  %v43_v57 = vld [vmem:[%s5417_s0] sm:$0xff] }
   0xf   :  { %4233 = vmatpush3.bf16.msra.mxu1 %v4230_v37  ;;  %v47_v58 = vld [vmem:[%s5417_s0 + $0x20] sm:$0xff] }
  0x11   :  { %4209 = vmatpush3.bf16.msra.mxu0 %v4208_v30 }
  0x12   :  { %4211 = vmatprep.subr.bf16.mxu0 %v4210_v34  ;;  %4039 = vmatmul.mubr.msk.f32.vlgmr.msra.gmra.mrb[0].mxu1 %vm90_vm0, %v48_v44 }
  0x15   :  { %4213 = vmatpush3.bf16.msra.mxu0 %v4212_v41 }
  0x16   :  { %4215 = vmatprep.subr.bf16.mxu0 %v4214_v45 }
  0x19   :  { %4217 = vmatpush3.bf16.msra.mxu0 %v4216_v48 }
  0x1a   :  { %4219 = vmatprep.subr.bf16.mxu0 %v4218_v51 }
  0x1d   :  { %4221 = vmatpush3.bf16.msra.mxu0 %v4220_v54 }
  0x1e   :  { %4223 = vmatprep.subr.bf16.mxu0 %v4222_v55 }
  0x21   :  { %4225 = vmatpush3.bf16.msra.mxu0 %v4224_v56 }
  0x24   :  { %162 = vmatmul.mubr.f32.vlgmr.msra.gmra.mrb[0].mxu0 %v43_v57 }
  0x25   :  { %17 = vsyncpa [#allocation3], 0  ;;  %166 = vmatprep.mubr.f32.mxu0 %v47_v58  ;;  %v46_v59 = vld [vmem:[%s5417_s0 + $0x18] sm:$0xff]  ;;  %v4310_v60 = vld [vmem:[%s5424_s7 + $0x44] ss:$8 sps:$4 sm:$0xff]   ;;  %v4460_v12 = vmov 0  }
  0x26   :  { %v4308_v61 = vld [vmem:[%s5424_s7 + $0x40] ss:$8 sps:$4 sm:$0xff]   ;;  %323 = vmatprep.subr.bf16.mxu0 %v4310_v60  ;;  %v4313_v62 = vld [vmem:[%s5424_s7 + $0x4] ss:$8 sps:$4 sm:$0xff]   ;;  %v4316_v0 = vld [vmem:[%s5424_s7 + $0x54] ss:$8 sps:$4 sm:$0xff]   ;;  %442 = vmatprep.mubr.bf16.mxu1 %v4460_v12 }
  0x27   :  { %324 = vmatpush1.bf16.msra.mxu0 %v4308_v61  ;;  %v4311_v63 = vld [vmem:[%s5424_s7] ss:$8 sps:$4 sm:$0xff]   ;;  %410 = vmatprep.subr.bf16.mxu1 %v4313_v62  ;;  %v4314_v1 = vld [vmem:[%s5424_s7 + $0x50] ss:$8 sps:$4 sm:$0xff]   ;;  %v4319_v2 = vld [vmem:[%s5424_s7 + $0x14] ss:$8 sps:$4 sm:$0xff]  }
  0x28   :  { %167 = vmatmul.mubr.f32.gmra.mrb[2].mxu0 %v46_v59  ;;  %411 = vmatpush1.bf16.msra.mxu1 %v4311_v63  ;;  %v4317_v3 = vld [vmem:[%s5424_s7 + $0x10] ss:$8 sps:$4 sm:$0xff]   ;;  %v4322_v4 = vld [vmem:[%s5424_s7 + $0x64] ss:$8 sps:$4 sm:$0xff]   ;;  %v4320_v5 = vld [vmem:[%s5424_s7 + $0x60] ss:$8 sps:$4 sm:$0xff]  }
  0x29   :  { %325 = vmatprep.subr.bf16.mxu0 %v4316_v0  ;;  %412 = vmatprep.subr.bf16.mxu1 %v4319_v2  ;;  %v4325_v6 = vld [vmem:[%s5424_s7 + $0x24] ss:$8 sps:$4 sm:$0xff]   ;;  %v4323_v7 = vld [vmem:[%s5424_s7 + $0x20] ss:$8 sps:$4 sm:$0xff]   ;;  %v4328_v8 = vld [vmem:[%s5424_s7 + $0x74] ss:$8 sps:$4 sm:$0xff]  }
  0x2a   :  { %v4326_v9 = vld [vmem:[%s5424_s7 + $0x70] ss:$8 sps:$4 sm:$0xff]   ;;  %v4331_v11 = vld [vmem:[%s5424_s7 + $0x34] ss:$8 sps:$4 sm:$0xff]   ;;  %355 = vmatprep.mubr.bf16.mxu0 %v4460_v12  ;;  %v4334_v13 = vld [vmem:[%s5424_s7 + $0x84] ss:$8 sps:$4 sm:$0xff]  }
  0x2b   :  { %326 = vmatpush1.bf16.msra.mxu0 %v4314_v1  ;;  %v4329_v10 = vld [vmem:[%s5424_s7 + $0x30] ss:$8 sps:$4 sm:$0xff]   ;;  %v4337_v14 = vld [vmem:[%s5424_s7 + $0xc4] ss:$8 sps:$4 sm:$0xff]   ;;  %v3797_v19 = vld [vmem:[%s5423_s6 + $0x120] ss:$0 sm:$0xff] }
  0x2c   :  { %413 = vmatpush1.bf16.msra.mxu1 %v4317_v3  ;;  %327 = vmatprep.subr.bf16.mxu0 %v4322_v4  ;;  %vm276_vm3 = vcmask 1041409   ;;  %vm319_vm4 = vcmask 523264   ;;  %v4332_v42 = vld [vmem:[%s5424_s7 + $0x80] ss:$8 sps:$4 sm:$0xff]   ;;  %v4340_v48 = vld [vmem:[%s5424_s7 + $0x94] ss:$8 sps:$4 sm:$0xff]  }
  0x2d   :  { %414 = vmatprep.subr.bf16.mxu1 %v4325_v6  ;;  %v4335_v52 = vld [vmem:[%s5424_s7 + $0xc0] ss:$8 sps:$4 sm:$0xff]   ;;  %v4343_v58 = vld [vmem:[%s5424_s7 + $0xd4] ss:$8 sps:$4 sm:$0xff]   ;;  %v4338_v61 = vld [vmem:[%s5424_s7 + $0x90] ss:$8 sps:$4 sm:$0xff]  }
  0x2e   :  { %v4346_v0 = vld [vmem:[%s5424_s7 + $0xa4] ss:$8 sps:$4 sm:$0xff]   ;;  %v4341_v2 = vld [vmem:[%s5424_s7 + $0xd0] ss:$8 sps:$4 sm:$0xff]   ;;  %v4344_v4 = vld [vmem:[%s5424_s7 + $0xa0] ss:$8 sps:$4 sm:$0xff]  }
  0x2f   :  { %328 = vmatpush1.bf16.msra.mxu0 %v4320_v5  ;;  %v4349_v3 = vld [vmem:[%s5424_s7 + $0xe4] ss:$8 sps:$4 sm:$0xff]   ;;  %v4352_v5 = vld [vmem:[%s5424_s7 + $0xb4] ss:$8 sps:$4 sm:$0xff]   ;;  %v4347_v6 = vld [vmem:[%s5424_s7 + $0xe0] ss:$8 sps:$4 sm:$0xff]  }
  0x30   :  { %415 = vmatpush1.bf16.msra.mxu1 %v4323_v7  ;;  %329 = vmatprep.subr.bf16.mxu0 %v4328_v8  ;;  %v4355_v7 = vld [vmem:[%s5424_s7 + $0xf4] ss:$8 sps:$4 sm:$0xff]   ;;  %v4350_v8 = vld [vmem:[%s5424_s7 + $0xb0] ss:$8 sps:$4 sm:$0xff]   ;;  %vm1070_vm5 = vcmask 1045504   ;;  %vm4462_vm6 = vmmov 0  }
  0x31   :  { %416 = vmatprep.subr.bf16.mxu1 %v4331_v11  ;;  %v4361_v11 = vld [vmem:[%s5424_s7 + $0x144] ss:$8 sps:$4 sm:$0xff]   ;;  %vm1066_vm7 = vcmask 48128   ;;  %vm1240_vm8 = vcmask 64512   ;;  %s4464_s16 = smov 112   ;;  %vm1154_vm10 = vcmask 130048  }
  0x32   :  { %vm1611_vm12 = vcmask 57344   ;;  %s4467_s28 = smov 104  }
  0x33   :  { %330 = vmatpush1.bf16.msra.mxu0 %v4326_v9  ;;  %v4358_v9 = vld [vmem:[%s5424_s7 + $0x104] ss:$8 sps:$4 sm:$0xff]  }
  0x34   :  { %417 = vmatpush1.bf16.msra.mxu1 %v4329_v10  ;;  %506 = vmatprep.subr.bf16.mxu0 %v4334_v13  ;;  %v4353_v10 = vld [vmem:[%s5424_s7 + $0xf0] ss:$8 sps:$4 sm:$0xff]   ;;  %v4356_v13 = vld [vmem:[%s5424_s7 + $0x100] ss:$8 sps:$4 sm:$0xff]  }
  0x35   :  { %604 = vmatprep.subr.bf16.mxu1 %v4337_v14 }
  0xe5   :  { %v4040_v15 = vpop.f32.mrb[0].mxu1 }
  0xe6   :  { %v238_v16 = vpop.f32.mrb[1].mxu1 }
  0xf7   :  { %v3954_v17 = vpop.f32.mrb[0].mxu0 }
  0xf8   :  { %v3955_v18 = vpop.f32.mrb[1].mxu0 }
  0xf9   :  { %v3956_v20 = vadd.f32 %v3955_v18, %v3954_v17  ;;  %v4367_v18 = vld [vmem:[%s5424_s7 + $0x154] ss:$8 sps:$4 sm:$0xff]  }
  0xfb   :  { %v3957_v21 = vpop.f32.mrb[2].mxu0  ;;  %v164_v22 = vadd.f32 %v3956_v20, %v3797_v19  ;;  %v4370_v20 = vld [vmem:[%s5424_s7 + $0x124] ss:$8 sps:$4 sm:$0xff]  }
  0xfc   :  { %v3958_v23 = vpop.f32.mrb[3].mxu0 }
  0xfd   :  { %v3959_v24 = vadd.f32 %v3958_v23, %v3957_v21  ;;  %v239_v25 = vadd.f32 %v238_v16, %v164_v22  ;;  %v4359_v16 = vld [vmem:[%s5424_s7 + $0x140] ss:$8 sps:$4 sm:$0xff]   ;;  %v4365_v21 = vld [vmem:[%s5424_s7 + $0x150] ss:$8 sps:$4 sm:$0xff]   ;;  %v4373_v22 = vld [vmem:[%s5424_s7 + $0x164] ss:$8 sps:$4 sm:$0xff]  }
  0xfe   :  { %v4368_v23 = vld [vmem:[%s5424_s7 + $0x120] ss:$8 sps:$4 sm:$0xff]  }
  0xff   :  { %v169_v26 = vadd.f32 %v3959_v24, %v3797_v19  ;;  %vm247_vm1 = vcmp.ge.f32.partialorder %v239_v25, 0.0  ;;  %v249_v27 = vmul.f32 0.01, %v239_v25  ;;  %v4362_v19 = vld [vmem:[%s5424_s7 + $0x110] ss:$8 sps:$4 sm:$0xff]  }
 0x100   :  { %v4376_v24 = vld [vmem:[%s5424_s7 + $0x134] ss:$8 sps:$4 sm:$0xff]  }
 0x101   :  { %v244_v28 = vadd.f32 %v4040_v15, %v169_v26  ;;  %v251_v29 = vsel %vm247_vm1, %v239_v25, %v249_v27  ;;  %v4364_v15 = vld [vmem:[%s5424_s7 + $0x114] ss:$8 sps:$4 sm:$0xff]   ;;  %v4371_v25 = vld [vmem:[%s5424_s7 + $0x160] ss:$8 sps:$4 sm:$0xff]   ;;  %v4374_v27 = vld [vmem:[%s5424_s7 + $0x130] ss:$8 sps:$4 sm:$0xff]  }
 0x102   :  { %v253_v30 = vpack.c.bf16 %v251_v29, %v251_v29  ;;  %v4379_v26 = vld [vmem:[%s5424_s7 + $0x174] ss:$8 sps:$4 sm:$0xff]   ;;  %v4377_v29 = vld [vmem:[%s5424_s7 + $0x170] ss:$8 sps:$4 sm:$0xff]  }
 0x103   :  { %vm248_vm2 = vcmp.ge.f32.partialorder %v244_v28, 0.0  ;;  %v250_v31 = vmul.f32 0.01, %v244_v28 }
 0x104   :  { %v273_v32 = vunpack.c.l.b16 %v253_v30  ;;  %v4385_v30 = vld [vmem:[%s5424_s7 + $0x1c4] ss:$8 sps:$4 sm:$0xff]  }
 0x105   :  { %v252_v33 = vsel %vm248_vm2, %v244_v28, %v250_v31  ;;  %v4382_v28 = vld [vmem:[%s5424_s7 + $0x184] ss:$8 sps:$4 sm:$0xff]   ;;  %v4380_v31 = vld [vmem:[%s5424_s7 + $0x180] ss:$8 sps:$4 sm:$0xff]  }
 0x106   :  { %v254_v34 = vpack.c.bf16 %v252_v33, %v252_v33  ;;  %v275_v36 = vrot.slane %v273_v32, 1  ;;  %v459_v37 = vrot.slane %v273_v32, 2  ;;  %v557_v38 = vrot.slane %v273_v32, 3  ;;  %v4388_v33 = vld [vmem:[%s5424_s7 + $0x194] ss:$8 sps:$4 sm:$0xff]  }
 0x107   :  { %v655_v39 = vrot.slane %v273_v32, 4  ;;  %v753_v40 = vrot.slane %v273_v32, 5  ;;  %v851_v41 = vrot.slane %v273_v32, 6  ;;  %v949_v60 = vrot.slane %v273_v32, 7 }
 0x108   :  { %v274_v35 = vunpack.c.l.b16 %v254_v34  ;;  %v4383_v34 = vld [vmem:[%s5424_s7 + $0x1c0] ss:$8 sps:$4 sm:$0xff]  }
 0x10a   :  { %v277_v43 = vsel %vm276_vm3, %v274_v35, %v275_v36  ;;  %v364_v44 = vrot.slane %v274_v35, 7  ;;  %v460_v45 = vrot.slane %v274_v35, 1  ;;  %v558_v46 = vrot.slane %v274_v35, 2  ;;  %v4391_v36 = vld [vmem:[%s5424_s7 + $0x1d4] ss:$8 sps:$4 sm:$0xff]  }
 0x10b   :  { %v278_v47 = vpack.c.b16 %v277_v43, %v277_v43  ;;  %v656_v49 = vrot.slane %v274_v35, 3  ;;  %v754_v50 = vrot.slane %v274_v35, 4  ;;  %v852_v51 = vrot.slane %v274_v35, 5  ;;  %v4403_v43 = vld [vmem:[%s5424_s7 + $0x1f4] ss:$8 sps:$4 sm:$0xff]  }
 0x10c   :  { %v365_v53 = vsel %vm276_vm3, %v364_v44, %v273_v32  ;;  %v461_v54 = vsel %vm276_vm3, %v460_v45, %v459_v37  ;;  %v559_v55 = vsel %vm276_vm3, %v558_v46, %v557_v38  ;;  %v950_v56 = vrot.slane %v274_v35, 6  ;;  %v4386_v37 = vld [vmem:[%s5424_s7 + $0x190] ss:$8 sps:$4 sm:$0xff]   ;;  %v4394_v38 = vld [vmem:[%s5424_s7 + $0x1a4] ss:$8 sps:$4 sm:$0xff]  }
 0x10d   :  { %3808 = vmatmul.mubr.msk.bf16.vlgmr.msra.gmra.mrb[4].mxu0 %vm319_vm4, %v278_v47  ;;  %v366_v57 = vpack.c.b16 %v365_v53, %v365_v53  ;;  %v4740_v59 = vsel %vm276_vm3, %v656_v49, %v655_v39  ;;  %v4747_v62 = vsel %vm276_vm3, %v754_v50, %v753_v40  ;;  %v4750_v63 = vsel %vm276_vm3, %v852_v51, %v851_v41  ;;  %v4389_v39 = vld [vmem:[%s5424_s7 + $0x1d0] ss:$8 sps:$4 sm:$0xff]   ;;  %v4397_v40 = vld [vmem:[%s5424_s7 + $0x1e4] ss:$8 sps:$4 sm:$0xff]   ;;  %v4392_v41 = vld [vmem:[%s5424_s7 + $0x1a0] ss:$8 sps:$4 sm:$0xff]  }
 0x10e   :  { %507 = vmatpush1.bf16.msra.mxu0 %v4332_v42  ;;  %538 = vmatprep.mubr.bf16.mxu0 %v4460_v12  ;;  %v4757_v1 = vsel %vm276_vm3, %v950_v56, %v949_v60  ;;  %v462_v14 = vpack.c.b16 %v461_v54, %v461_v54  ;;  %v560_v17 = vpack.c.b16 %v559_v55, %v559_v55  ;;  %v4400_v42 = vld [vmem:[%s5424_s7 + $0x1b4] ss:$8 sps:$4 sm:$0xff]   ;;  %v4398_v44 = vld [vmem:[%s5424_s7 + $0x1b0] ss:$8 sps:$4 sm:$0xff]   ;;  %v4461_v47 = vmov 0.0  }
 0x10f   :  { %3817 = vmatmul.mubr.msk.bf16.vlgmr.msra.gmra.mrb[4].mxu1 %vm319_vm4, %v366_v57  ;;  %508 = vmatprep.subr.bf16.mxu0 %v4340_v48  ;;  %v658_v32 = vpack.c.b16 %v4740_v59, %v4740_v59  ;;  %v756_v35 = vpack.c.b16 %v4747_v62, %v4747_v62  ;;  %v4401_v45 = vld [vmem:[%s5424_s7 + $0x1f0] ss:$8 sps:$4 sm:$0xff]   ;;  %v854_v46 = vpack.c.b16 %v4750_v63, %v4750_v63  ;;  %v1060_v48 = vld [vmem:[%s5425_s8] sm:$0x3f]  ;;  %v4463_v53 = vmov 0.0|0.0  }
 0x110   :  { %605 = vmatpush1.bf16.msra.mxu1 %v4335_v52  ;;  %636 = vmatprep.mubr.bf16.mxu1 %v4460_v12  ;;  %v952_v49 = vpack.c.b16 %v4757_v1, %v4757_v1  ;;  %v1059_v50 = vld [vmem:[%s5418_s1] sm:$0x3]  ;;  %v1147_v51 = vld [vmem:[%s5425_s8 + $0x10] sm:$0xff]  ;;  %v1148_v52 = vld [vmem:[%s5425_s8 + $0x18] sm:$0xff] }
 0x111   :  { %606 = vmatprep.subr.bf16.mxu1 %v4343_v58  ;;  %v4235_v54 = vpack.c.bf16 %v1148_v52, %v1147_v51  ;;  %v4465_v52 = vmov 1966171168  }
 0x112   :  { %509 = vmatpush1.bf16.msra.mxu0 %v4338_v61 }
 0x113   :  { %510 = vmatprep.subr.bf16.mxu0 %v4346_v0 }
 0x114   :  { %607 = vmatpush1.bf16.msra.mxu1 %v4341_v2 }
 0x115   :  { %608 = vmatprep.subr.bf16.mxu1 %v4349_v3 }
 0x116   :  { %511 = vmatpush1.bf16.msra.mxu0 %v4344_v4 }
 0x117   :  { %512 = vmatprep.subr.bf16.mxu0 %v4352_v5 }
 0x118   :  { %609 = vmatpush1.bf16.msra.mxu1 %v4347_v6 }
 0x119   :  { %610 = vmatprep.subr.bf16.mxu1 %v4355_v7 }
 0x11a   :  { %513 = vmatpush1.bf16.msra.mxu0 %v4350_v8 }
 0x11b   :  { %702 = vmatprep.subr.bf16.mxu0 %v4358_v9 }
 0x11c   :  { %611 = vmatpush1.bf16.msra.mxu1 %v4353_v10 }
 0x11d   :  { %3826 = vmatmul.mubr.msk.bf16.vlgmr.msra.gmra.mrb[8].mxu0 %vm319_vm4, %v462_v14  ;;  %800 = vmatprep.subr.bf16.mxu1 %v4361_v11 }
 0x11e   :  { %703 = vmatpush1.bf16.msra.mxu0 %v4356_v13  ;;  %734 = vmatprep.mubr.bf16.mxu0 %v4460_v12 }
 0x11f   :  { %3835 = vmatmul.mubr.msk.bf16.vlgmr.msra.gmra.mrb[8].mxu1 %vm319_vm4, %v560_v17  ;;  %704 = vmatprep.subr.bf16.mxu0 %v4364_v15 }
 0x120   :  { %801 = vmatpush1.bf16.msra.mxu1 %v4359_v16  ;;  %832 = vmatprep.mubr.bf16.mxu1 %v4460_v12 }
 0x121   :  { %802 = vmatprep.subr.bf16.mxu1 %v4367_v18 }
 0x122   :  { %705 = vmatpush1.bf16.msra.mxu0 %v4362_v19 }
 0x123   :  { %706 = vmatprep.subr.bf16.mxu0 %v4370_v20 }
 0x124   :  { %803 = vmatpush1.bf16.msra.mxu1 %v4365_v21 }
 0x125   :  { %804 = vmatprep.subr.bf16.mxu1 %v4373_v22 }
 0x126   :  { %707 = vmatpush1.bf16.msra.mxu0 %v4368_v23 }
 0x127   :  { %708 = vmatprep.subr.bf16.mxu0 %v4376_v24 }
 0x128   :  { %805 = vmatpush1.bf16.msra.mxu1 %v4371_v25 }
 0x129   :  { %806 = vmatprep.subr.bf16.mxu1 %v4379_v26 }
 0x12a   :  { %709 = vmatpush1.bf16.msra.mxu0 %v4374_v27 }
 0x12b   :  { %898 = vmatprep.subr.bf16.mxu0 %v4382_v28 }
 0x12c   :  { %807 = vmatpush1.bf16.msra.mxu1 %v4377_v29 }
 0x12d   :  { %3844 = vmatmul.mubr.msk.bf16.vlgmr.msra.gmra.mrb[12].mxu0 %vm319_vm4, %v658_v32  ;;  %996 = vmatprep.subr.bf16.mxu1 %v4385_v30 }
 0x12e   :  { %899 = vmatpush1.bf16.msra.mxu0 %v4380_v31  ;;  %930 = vmatprep.mubr.bf16.mxu0 %v4460_v12 }
 0x12f   :  { %3853 = vmatmul.mubr.msk.bf16.vlgmr.msra.gmra.mrb[12].mxu1 %vm319_vm4, %v756_v35  ;;  %900 = vmatprep.subr.bf16.mxu0 %v4388_v33  ;;  %v1313_v35 = vld [vmem:[%s5419_s2] sm:$0xff] }
 0x130   :  { %997 = vmatpush1.bf16.msra.mxu1 %v4383_v34  ;;  %1028 = vmatprep.mubr.bf16.mxu1 %v4460_v12  ;;  %v4395_v12 = vld [vmem:[%s5424_s7 + $0x1e0] ss:$8 sps:$4 sm:$0xff]  }
 0x131   :  { %998 = vmatprep.subr.bf16.mxu1 %v4391_v36 }
 0x132   :  { %901 = vmatpush1.bf16.msra.mxu0 %v4386_v37 }
 0x133   :  { %902 = vmatprep.subr.bf16.mxu0 %v4394_v38 }
 0x134   :  { %999 = vmatpush1.bf16.msra.mxu1 %v4389_v39  ;;  %v3872_v39 = vld [vmem:[%s5425_s8 + $0x8] ss:$0 sm:$0xff] }
 0x135   :  { %1000 = vmatprep.subr.bf16.mxu1 %v4397_v40 }
 0x136   :  { %903 = vmatpush1.bf16.msra.mxu0 %v4392_v41 }
 0x137   :  { %904 = vmatprep.subr.bf16.mxu0 %v4400_v42 }
 0x138   :  { %1001 = vmatpush1.bf16.msra.mxu1 %v4395_v12 }
 0x139   :  { %1002 = vmatprep.subr.bf16.mxu1 %v4403_v43  ;;  %v1231_v43 = vld [vmem:[%s5426_s9] sm:$0xff] }
 0x13a   :  { %905 = vmatpush1.bf16.msra.mxu0 %v4398_v44 }
 0x13b   :  { %4041 = vmatprep.subr.mxu0 %v4461_v47 }
 0x13c   :  { %1003 = vmatpush1.bf16.msra.mxu1 %v4401_v45  ;;  %v3877_v45 = vld [vmem:[%s5426_s9 + $0x8] ss:$0 sm:$0xff] }
 0x13d   :  { %3862 = vmatmul.mubr.msk.bf16.vlgmr.msra.gmra.mrb[16].mxu0 %vm319_vm4, %v854_v46  ;;  %1320 = vrot.lane.b32.xlu1 %v3877_v45, %s4464_s16 }
 0x13e   :  { %4042 = vmatpush3.msk.msra.mxu0 %vm1070_vm5, %v1060_v48  ;;  %4043 = vmatprep.mubr.msk.f32.mxu0 %vm4462_vm6, %v4461_v47 }
 0x13f   :  { %3871 = vmatmul.mubr.msk.bf16.vlgmr.msra.gmra.mrb[16].mxu1 %vm319_vm4, %v952_v49  ;;  %4234 = vmatprep.subr.bf16.mxu0 %v4463_v53  ;;  %v1314_v49 = vld [vmem:[%s5419_s2 + $0x8] sm:$0xff] }
 0x140   :  { %4060 = vmatprep.mubr.msk.f32.mxu1 %vm1240_vm8, %v1313_v35 }
 0x145   :  { %4044 = vmatmul.mubr.msk.f32.vlgmr.msra.gmra.mrb[20].mxu0 %vm1066_vm7, %v1059_v50  ;;  %vm3780_vm7 = vcmask 519170  }
 0x146   :  { %4050 = vmatprep.mubr.msk.f32.mxu0 %vm4462_vm6, %v4461_v47  ;;  %4236 = vmatpush3.bf16.msra.mxu0 %v4235_v54  ;;  %v1415_v54 = vunpack.c.l.s4 %v4465_v52 }
 0x147   :  { %4053 = vmatprep.subr.mxu0 %v4461_v47 }
 0x1e0   :  { %v357_v55 = vpop.f32.mrb[4].mxu0 }
 0x1e1   :  { %v359_v56 = vpop.f32.mrb[5].mxu0 }
 0x1e2   :  { %v361_v57 = vpop.f32.mrb[6].mxu0  ;;  %v444_v58 = vpop.f32.mrb[4].mxu1 }
 0x1e3   :  { %v445_v59 = vadd.f32 %v444_v58, %v357_v55  ;;  %v362_v60 = vpop.f32.mrb[7].mxu0  ;;  %v446_v61 = vpop.f32.mrb[5].mxu1  ;;  %v1041_v55 = vlaneseq }
 0x1e4   :  { %v447_v62 = vadd.f32 %v446_v61, %v359_v56  ;;  %v448_v63 = vpop.f32.mrb[6].mxu1  ;;  %v1416_v56 = vunpack.c.0.s8 %v1415_v54 }
 0x1e5   :  { %v449_v0 = vpop.f32.mrb[7].mxu1  ;;  %v4959_v57 = vshrl.u32 %v1041_v55, 7  ;;  %v1321_v63 = vpop.permute.xlu1 %1320 }
 0x1e7   :  { %v4962_v58 = vsub.s32 %v1416_v56, %v4959_v57 }
 0x1f0   :  { %v540_v1 = vpop.f32.mrb[8].mxu0 }
 0x1f1   :  { %v547_v2 = vadd.f32 %v540_v1, %v445_v59  ;;  %v542_v3 = vpop.f32.mrb[9].mxu0 }
 0x1f2   :  { %v548_v4 = vadd.f32 %v542_v3, %v447_v62  ;;  %v544_v5 = vpop.f32.mrb[10].mxu0  ;;  %v638_v6 = vpop.f32.mrb[8].mxu1 }
 0x1f3   :  { %v645_v7 = vadd.f32 %v638_v6, %v547_v2  ;;  %v545_v8 = vpop.f32.mrb[11].mxu0  ;;  %v640_v9 = vpop.f32.mrb[9].mxu1 }
 0x1f4   :  { %v646_v10 = vadd.f32 %v640_v9, %v548_v4  ;;  %v642_v11 = vpop.f32.mrb[10].mxu1 }
 0x1f5   :  { %v643_v13 = vpop.f32.mrb[11].mxu1 }
 0x200   :  { %v736_v14 = vpop.f32.mrb[12].mxu0 }
 0x201   :  { %v743_v15 = vadd.f32 %v736_v14, %v645_v7  ;;  %v738_v16 = vpop.f32.mrb[13].mxu0  ;;  %v3881_v7 = vld.sshfl [vmem:[%s5420_s3] sm:$0x11 pattern:$0x75316420]  ;;  %s4466_s3 = smov 120  }
 0x202   :  { %v744_v17 = vadd.f32 %v738_v16, %v646_v10  ;;  %v740_v18 = vpop.f32.mrb[14].mxu0  ;;  %v834_v19 = vpop.f32.mrb[12].mxu1  ;;  %v1413_v8 = vcombine.high %v3881_v7, %v3881_v7  ;;  %v1420_v10 = vrot.slane %v3881_v7, %v4962_v58 }
 0x203   :  { %v841_v20 = vadd.f32 %v834_v19, %v743_v15  ;;  %v741_v21 = vpop.f32.mrb[15].mxu0  ;;  %v836_v22 = vpop.f32.mrb[13].mxu1 }
 0x204   :  { %v842_v23 = vadd.f32 %v836_v22, %v744_v17  ;;  %v838_v24 = vpop.f32.mrb[14].mxu1  ;;  %v4990_v9 = vrot.slane %v1413_v8, %v4962_v58  ;;  %vm4994_vm13 = vcmp.gt.f32.partialorder %v1420_v10, 0.5 }
 0x205   :  { %v839_v25 = vpop.f32.mrb[15].mxu1 }
 0x206   :  { %vm1608_vm11 = vcmp.gt.f32.partialorder %v4990_v9, 0.5 }
 0x210   :  { %v932_v26 = vpop.f32.mrb[16].mxu0 }
 0x211   :  { %v939_v27 = vadd.f32 %v932_v26, %v841_v20  ;;  %v934_v28 = vpop.f32.mrb[17].mxu0 }
 0x212   :  { %v940_v29 = vadd.f32 %v934_v28, %v842_v23  ;;  %v936_v30 = vpop.f32.mrb[18].mxu0  ;;  %v1030_v31 = vpop.f32.mrb[16].mxu1 }
 0x213   :  { %v4917_v32 = vadd.f32 %v1030_v31, %v939_v27  ;;  %v937_v33 = vpop.f32.mrb[19].mxu0  ;;  %v1032_v34 = vpop.f32.mrb[17].mxu1 }
 0x214   :  { %v4922_v36 = vadd.f32 %v1032_v34, %v940_v29  ;;  %v1034_v37 = vpop.f32.mrb[18].mxu1  ;;  %v5009_v34 = vsub.s32 0, %v4959_v57 }
 0x215   :  { %v1035_v38 = vpop.f32.mrb[19].mxu1 }
 0x218   :  { %v1140_v40 = vpop.f32.mrb[20].mxu0 }
 0x219   :  { %v4928_v41 = vadd.f32 %v3872_v39, %v1140_v40  ;;  %v4045_v42 = vpop.f32.mrb[21].mxu0 }
 0x21b   :  { %1238 = vrot.lane.b32.xlu0 %v4928_v41, %s4464_s16  ;;  %vm1144_vm9 = vcmp.ge.f32.partialorder %v4928_v41, 0.0  ;;  %v1145_v12 = vmul.f32 0.01, %v4928_v41 }
 0x21d   :  { %v1146_v44 = vsel %vm1144_vm9, %v4928_v41, %v1145_v12  ;;  %v1430_v12 = vld [vmem:[%s5427_s10 + $0xe0] sm:$0xff] }
 0x21e   :  { %4051 = vmatmul.mubr.msk.f32.vlgmr.msra.gmra.mrb[22].mxu0 %vm1154_vm10, %v1146_v44 }
 0x21f   :  { %1316 = vrot.lane.b32.xlu0 %v1231_v43, %s4464_s16  ;;  %4054 = vmatpush3.msra.mxu0 %v1231_v43  ;;  %v1431_v43 = vld [vmem:[%s5427_s10 + $0xe8] sm:$0xff] }
 0x220   :  { %4055 = vmatprep.mubr.msk.f32.mxu0 %vm4462_vm6, %v4461_v47  ;;  %4063 = vmatprep.subr.mxu0 %v4461_v47 }
 0x28d   :  { %v1239_v46 = vpop.permute.xlu0 %1238 }
 0x28e   :  { %4056 = vmatmul.mubr.msk.f32.vlgmr.msra.gmra.mrb[24].mxu0 %vm1240_vm8, %v1239_v46 }
 0x28f   :  { %4065 = vmatprep.mubr.msk.f32.mxu0 %vm4462_vm6, %v4461_v47 }
 0x291   :  { %v1317_v48 = vpop.permute.xlu0 %1316 }
 0x292   :  { %4058 = vmatprep.subr.mxu1 %v1317_v48 }
 0x293   :  { %4059 = vmatpush3.msra.mxu1 %v1317_v48 }
 0x294   :  { %4061 = vmatmul.mubr.msk.f32.vlgmr.msra.gmra.mrb[2].mxu1 %vm1240_vm8, %v1314_v49  ;;  %4068 = vmatprep.subr.mxu1 %v4461_v47 }
 0x295   :  { %4070 = vmatprep.mubr.msk.f32.mxu1 %vm4462_vm6, %v4461_v47 }
 0x2f1   :  { %v4957_v50 = vpop.f32.mrb[22].mxu0 }
 0x2f2   :  { %v4052_v51 = vpop.f32.mrb[23].mxu0 }
 0x2f3   :  { %v1786_v51 = vld [vmem:[%s5427_s10 + $0xd0] sm:$0xff] }
 0x361   :  { %v1309_v59 = vpop.f32.mrb[24].mxu0 }
 0x362   :  { %v4964_v60 = vadd.f32 %v3877_v45, %v1309_v59  ;;  %v4057_v61 = vpop.f32.mrb[25].mxu0  ;;  %v4238_v45 = vpack.c.bf16 %v1431_v43, %v1430_v12  ;;  %v2277_v12 = vld [vmem:[%s5427_s10 + $0xd8] sm:$0xff] }
 0x364   :  { %v1439_v62 = vrot.slane %v4964_v60, %v4962_v58 }
 0x366   :  { %v1440_v0 = vcombine.high %v1439_v62, %v1439_v62  ;;  %v1447_v6 = vrot.slane %v1439_v62, %v4962_v58 }
 0x367   :  { %v4062_v1 = vpop.f32.mrb[2].mxu1 }
 0x368   :  { %v4968_v2 = vadd.f32 %v4062_v1, %v1321_v63  ;;  %v1395_v3 = vpop.f32.mrb[3].mxu1  ;;  %v1454_v5 = vrot.slane %v1440_v0, %v4962_v58  ;;  %v1938_v37 = vrot.slane %v1447_v6, %v5009_v34 }
 0x369   :  { %v4970_v4 = vadd.f32 %v1395_v3, %v1321_v63 }
 0x36a   :  { %4069 = vmatpush3.xpose.msk.msra.mxu1 %vm1240_vm8, %v4968_v2  ;;  %v2020_v35 = vrot.slane %v1454_v5, %v5009_v34 }
 0x36b   :  { %4064 = vmatpush3.xpose.msk.msra.mxu0 %vm1240_vm8, %v4970_v4  ;;  %4078 = vmatprep.subr.mxu1 %v4461_v47 }
 0x36c   :  { %4073 = vmatprep.subr.mxu0 %v4461_v47 }
 0x36d   :  { %4071 = vmatmul.mubr.msk.f32.vlgmr.msra.gmra.mrb[20].mxu1 %vm1240_vm8, %v1454_v5 }
 0x36e   :  { %4066 = vmatmul.mubr.msk.f32.vlgmr.msra.gmra.mrb[26].mxu0 %vm1240_vm8, %v1447_v6  ;;  %4080 = vmatprep.mubr.msk.f32.mxu1 %vm4462_vm6, %v4461_v47 }
 0x36f   :  { %4075 = vmatprep.mubr.msk.f32.mxu0 %vm4462_vm6, %v4461_v47 }
 0x440   :  { %v1601_v11 = vpop.f32.mrb[20].mxu1 }
 0x441   :  { %v1606_v13 = vmul.f32 0.35355338, %v1601_v11  ;;  %v1526_v14 = vpop.f32.mrb[26].mxu0  ;;  %v4072_v15 = vpop.f32.mrb[21].mxu1 }
 0x442   :  { %v1605_v17 = vmul.f32 0.35355338, %v1526_v14  ;;  %v4067_v18 = vpop.f32.mrb[27].mxu0 }
 0x443   :  { %v1610_v19 = vsel %vm1608_vm11, %v1606_v13, -1e+09 }
 0x444   :  { %v1615_v20 = vsel %vm1611_vm12, %v1610_v19, -inf  ;;  %v1609_v21 = vsel %vm4994_vm13, %v1605_v17, -1e+09 }
 0x445   :  { %1616 = vmax.xlane.f32.xlu1 %v1615_v20  ;;  %v1612_v22 = vsel %vm1611_vm12, %v1609_v21, -inf }
 0x446   :  { %1613 = vmax.xlane.f32.xlu0 %v1612_v22 }
 0x4d2   :  { %v1617_v23 = vpop.xlane.xlu1 %1616 }
 0x4d3   :  { %v1619_v24 = vsub.f32 %v1610_v19, %v1617_v23  ;;  %v1614_v25 = vpop.xlane.xlu0 %1613 }
 0x4d4   :  { %v1618_v26 = vsub.f32 %v1609_v21, %v1614_v25 }
 0x4d5   :  { %v1622_v27 = vmul.f32 1.442695, %v1619_v24 }
 0x4d6   :  { %v1620_v28 = vmul.f32 1.442695, %v1618_v26 }
 0x4d7   :  { %4404 = vpow2.f32 %v1622_v27 }
 0x4d8   :  { %4406 = vpow2.f32 %v1620_v28 }
 0x4e1   :  { %v4405_v29 = vpop.eup %4404 }
 0x4e2   :  { %v4407_v30 = vpop.eup %4406  ;;  %v1627_v31 = vsel %vm1611_vm12, %v4405_v29, 0.0 }
 0x4e3   :  { %1628 = vadd.xlane.f32.xlu0 %v1627_v31  ;;  %v1624_v33 = vsel %vm1611_vm12, %v4407_v30, 0.0 }
 0x4e4   :  { %1625 = vadd.xlane.f32.xlu1 %v1624_v33 }
 0x4f5   :  { %1634 = vrot.lane.b32.xlu1 %v4970_v4, %s4464_s16 }
 0x4f9   :  { %1710 = vrot.lane.b32.xlu0 %v4968_v2, %s4464_s16  ;;  %2023 = vrot.lane.b32.xlu1 %v4968_v2, %s4466_s3 }
 0x4fd   :  { %1941 = vrot.lane.b32.xlu0 %v4970_v4, %s4466_s3  ;;  %2021 = vrot.lane.b32.xlu1 %v2020_v35, %s4466_s3  ;;  %v3897_v35 = vld [vmem:[%s5426_s9 + $0x18] ss:$0 sm:$0xff] }
 0x501   :  { %1939 = vrot.lane.b32.xlu0 %v1938_v37, %s4466_s3 }
 0x570   :  { %v1629_v38 = vpop.xlane.xlu0 %1628 }
 0x571   :  { %4408 = vrcp.f32 %v1629_v38  ;;  %v1626_v39 = vpop.xlane.xlu1 %1625 }
 0x572   :  { %4410 = vrcp.f32 %v1626_v39 }
 0x574   :  { %v1711_v40 = vpop.permute.xlu0 %1710 }
 0x575   :  { %v1635_v42 = vpop.permute.xlu1 %1634  ;;  %4079 = vmatpush3.msra.mxu1 %v1711_v40 }
 0x576   :  { %4074 = vmatpush3.msra.mxu0 %v1635_v42  ;;  %4237 = vmatprep.subr.bf16.mxu1 %v4463_v53 }
 0x577   :  { %4083 = vmatprep.subr.mxu0 %v4461_v47 }
 0x578   :  { %v1942_v55 = vpop.permute.xlu0 %1941 }
 0x579   :  { %v2024_v52 = vpop.permute.xlu1 %2023 }
 0x57b   :  { %v4409_v44 = vpop.eup %4408 }
 0x57c   :  { %v4411_v46 = vpop.eup %4410  ;;  %v1633_v48 = vmul.f32 %v4409_v44, %v4405_v29  ;;  %v1940_v3 = vpop.permute.xlu0 %1939 }
 0x57d   :  { %v1632_v49 = vmul.f32 %v4411_v46, %v4407_v30  ;;  %v2022_v54 = vpop.permute.xlu1 %2021 }
 0x57e   :  { %4081 = vmatmul.mubr.msk.f32.vlgmr.msra.gmra.mrb[22].mxu1 %vm1240_vm8, %v1633_v48 }
 0x57f   :  { %4239 = vmatpush3.bf16.msra.mxu1 %v4238_v45  ;;  %4076 = vmatmul.mubr.msk.f32.vlgmr.msra.gmra.mrb[28].mxu0 %vm1240_vm8, %v1632_v49  ;;  %v2435_v49 = vld [vmem:[%s5421_s4] sm:$0xff] }
 0x580   :  { %4092 = vmatprep.mubr.msk.f32.mxu1 %vm4462_vm6, %v4461_v47  ;;  %4100 = vmatprep.subr.mxu1 %v4461_v47 }
 0x581   :  { %4084 = vmatpush3.msra.mxu0 %v1786_v51  ;;  %4085 = vmatprep.mubr.msk.f32.mxu0 %vm4462_vm6, %v4461_v47 }
 0x582   :  { %4093 = vmatmul.mubr.msk.f32.vlgmr.msra.gmra.mrb[24].mxu1 %vm1154_vm10, %v4964_v60  ;;  %4095 = vmatprep.subr.mxu0 %v4461_v47 }
 0x583   :  { %4102 = vmatprep.mubr.msk.f32.mxu1 %vm4462_vm6, %v4461_v47 }
 0x588   :  { %4101 = vmatpush3.xpose.msk.msra.mxu1 %vm1240_vm8, %v2024_v52 }
 0x589   :  { %4110 = vmatprep.subr.mxu1 %v4461_v47 }
 0x58b   :  { %4103 = vmatmul.mubr.msk.f32.vlgmr.msra.gmra.mrb[26].mxu1 %vm1240_vm8, %v2022_v54  ;;  %v2436_v54 = vld [vmem:[%s5421_s4 + $0x8] sm:$0xff] }
 0x58c   :  { %4112 = vmatprep.mubr.msk.f32.mxu1 %vm4462_vm6, %v4461_v47 }
 0x651   :  { %v1782_v56 = vpop.f32.mrb[22].mxu1 }
 0x652   :  { %v1789_v59 = vrot.slane %v1782_v56, 7  ;;  %v1706_v60 = vpop.f32.mrb[28].mxu0  ;;  %v4082_v61 = vpop.f32.mrb[23].mxu1 }
 0x653   :  { %v4077_v62 = vpop.f32.mrb[29].mxu0 }
 0x654   :  { %v1790_v63 = vsel %vm276_vm3, %v1789_v59, %v1706_v60 }
 0x655   :  { %4086 = vmatmul.mubr.msk.f32.vlgmr.msra.gmra.mrb[30].mxu0 %vm1240_vm8, %v1790_v63  ;;  %v1931_v0 = vpop.f32.mrb[24].mxu1 }
 0x656   :  { %4096 = vmatpush3.xpose.msk.msra.mxu0 %vm1240_vm8, %v1942_v55  ;;  %v4094_v1 = vpop.f32.mrb[25].mxu1  ;;  %4097 = vmatprep.mubr.msk.f32.mxu0 %vm4462_vm6, %v4461_v47 }
 0x657   :  { %4105 = vmatprep.subr.mxu0 %v4461_v47 }
 0x659   :  { %4098 = vmatmul.mubr.msk.f32.vlgmr.msra.gmra.mrb[32].mxu0 %vm1240_vm8, %v1940_v3 }
 0x65a   :  { %4107 = vmatprep.mubr.msk.f32.mxu0 %vm4462_vm6, %v4461_v47 }
 0x65e   :  { %v2095_v5 = vpop.f32.mrb[26].mxu1 }
 0x65f   :  { %v2100_v6 = vmul.f32 0.35355338, %v2095_v5  ;;  %v4104_v7 = vpop.f32.mrb[27].mxu1 }
 0x661   :  { %v2102_v8 = vsel %vm1608_vm11, %v2100_v6, -1e+09 }
 0x662   :  { %v2106_v10 = vsel %vm1611_vm12, %v2102_v8, -inf }
 0x663   :  { %2107 = vmax.xlane.f32.xlu1 %v2106_v10 }
 0x6f0   :  { %v2108_v11 = vpop.xlane.xlu1 %2107 }
 0x6f1   :  { %v2110_v13 = vsub.f32 %v2102_v8, %v2108_v11  ;;  %v3901_v8 = vld.sshfl [vmem:[%s5422_s5] sm:$0x11 pattern:$0x75316420] }
 0x6f2   :  { %v2535_v10 = vcombine.high %v3901_v8, %v3901_v8 }
 0x6f3   :  { %v2113_v14 = vmul.f32 1.442695, %v2110_v13  ;;  %v2542_v13 = vrot.slane %v3901_v8, %v4962_v58 }
 0x6f4   :  { %v5139_v11 = vrot.slane %v2535_v10, %v4962_v58 }
 0x6f5   :  { %4412 = vpow2.f32 %v2113_v14  ;;  %vm5143_vm15 = vcmp.gt.f32.partialorder %v2542_v13, 0.5 }
 0x6f6   :  { %vm2730_vm14 = vcmp.gt.f32.partialorder %v5139_v11, 0.5 }
 0x6ff   :  { %v4413_v23 = vpop.eup %4412 }
 0x700   :  { %v2118_v24 = vsel %vm1611_vm12, %v4413_v23, 0.0 }
 0x728   :  { %v1859_v15 = vpop.f32.mrb[30].mxu0 }
 0x729   :  { %v5061_v17 = vadd.f32 %v1931_v0, %v1859_v15  ;;  %v4087_v18 = vpop.f32.mrb[31].mxu0 }
 0x72c   :  { %v2013_v19 = vpop.f32.mrb[32].mxu0 }
 0x72d   :  { %v2099_v20 = vmul.f32 0.35355338, %v2013_v19  ;;  %v4099_v21 = vpop.f32.mrb[33].mxu0  ;;  %v3501_v19 = vld [vmem:[%s5427_s10 + $0xc8] sm:$0xff] }
 0x72f   :  { %v2101_v22 = vsel %vm4994_vm13, %v2099_v20, -1e+09 }
 0x730   :  { %v2103_v9 = vsel %vm1611_vm12, %v2101_v22, -inf }
 0x731   :  { %2104 = vmax.xlane.f32.xlu0 %v2103_v9 }
 0x735   :  { %2119 = vadd.xlane.f32.xlu0 %v2118_v24 }
 0x74b   :  { %2201 = vrot.lane.b32.xlu0 %v4968_v2, %s4467_s28  ;;  %v2355_v2 = vld [vmem:[%s5426_s9 + $0x10] sm:$0xff] }
 0x74f   :  { %2438 = vrot.lane.b32.xlu0 %v2355_v2, %s4464_s16 }
 0x7be   :  { %v2105_v25 = vpop.xlane.xlu0 %2104 }
 0x7bf   :  { %v2109_v26 = vsub.f32 %v2101_v22, %v2105_v25 }
 0x7c1   :  { %v2111_v27 = vmul.f32 1.442695, %v2109_v26 }
 0x7c2   :  { %v2120_v28 = vpop.xlane.xlu0 %2119 }
 0x7c3   :  { %4414 = vpow2.f32 %v2111_v27 }
 0x7c4   :  { %4416 = vrcp.f32 %v2120_v28 }
 0x7c6   :  { %v2202_v29 = vpop.permute.xlu0 %2201 }
 0x7c7   :  { %4111 = vmatpush3.msra.mxu1 %v2202_v29 }
 0x7c8   :  { %4120 = vmatprep.subr.mxu1 %v4461_v47 }
 0x7ca   :  { %v2439_v43 = vpop.permute.xlu0 %2438 }
 0x7cd   :  { %v4415_v16 = vpop.eup %4414 }
 0x7ce   :  { %v4417_v30 = vpop.eup %4416  ;;  %v2115_v31 = vsel %vm1611_vm12, %v4415_v16, 0.0 }
 0x7cf   :  { %v2124_v33 = vmul.f32 %v4417_v30, %v4413_v23  ;;  %2116 = vadd.xlane.f32.xlu1 %v2115_v31 }
 0x7d1   :  { %4113 = vmatmul.mubr.msk.f32.vlgmr.msra.gmra.mrb[28].mxu1 %vm1240_vm8, %v2124_v33 }
 0x7d2   :  { %4122 = vmatprep.mubr.msk.f32.mxu1 %vm4462_vm6, %v4461_v47  ;;  %4121 = vmatpush3.msra.mxu1 %v2355_v2 }
 0x7d3   :  { %4130 = vmatprep.subr.mxu1 %v4461_v47 }
 0x7e0   :  { %2125 = vrot.lane.b32.xlu1 %v4970_v4, %s4467_s28 }
 0x7e4   :  { %2361 = vrot.lane.b32.xlu1 %v4928_v41, %s4467_s28 }
 0x7e8   :  { %2442 = vrot.lane.b32.xlu1 %v3897_v35, %s4464_s16 }
 0x85c   :  { %v2117_v37 = vpop.xlane.xlu1 %2116 }
 0x85d   :  { %4418 = vrcp.f32 %v2117_v37 }
 0x860   :  { %v2126_v4 = vpop.permute.xlu1 %2125 }
 0x861   :  { %4106 = vmatpush3.msra.mxu0 %v2126_v4 }
 0x862   :  { %4115 = vmatprep.subr.mxu0 %v4461_v47 }
 0x864   :  { %v2362_v41 = vpop.permute.xlu1 %2361 }
 0x865   :  { %4123 = vmatmul.mubr.msk.f32.vlgmr.msra.gmra.mrb[30].mxu1 %vm1240_vm8, %v2362_v41 }
 0x866   :  { %4132 = vmatprep.mubr.msk.f32.mxu1 %vm4462_vm6, %v4461_v47 }
 0x867   :  { %v4419_v38 = vpop.eup %4418 }
 0x868   :  { %v2123_v39 = vmul.f32 %v4419_v38, %v4415_v16  ;;  %v2443_v62 = vpop.permute.xlu1 %2442 }
 0x86a   :  { %4108 = vmatmul.mubr.msk.f32.vlgmr.msra.gmra.mrb[34].mxu0 %vm1240_vm8, %v2123_v39  ;;  %v2552_v39 = vld [vmem:[%s5427_s10 + $0x100] sm:$0xff] }
 0x86b   :  { %4117 = vmatprep.mubr.msk.f32.mxu0 %vm4462_vm6, %v4461_v47  ;;  %4116 = vmatpush3.msra.mxu0 %v2277_v12 }
 0x86c   :  { %4125 = vmatprep.subr.mxu0 %v2439_v43 }
 0x8a4   :  { %v2273_v40 = vpop.f32.mrb[28].mxu1 }
 0x8a5   :  { %v4114_v42 = vpop.f32.mrb[29].mxu1  ;;  %v2280_v46 = vrot.slane %v2273_v40, 7  ;;  %v2553_v40 = vld [vmem:[%s5427_s10 + $0x108] sm:$0xff] }
 0x8a6   :  { %v4241_v12 = vpack.c.bf16 %v2553_v40, %v2552_v39 }
 0x938   :  { %v2431_v44 = vpop.f32.mrb[30].mxu1 }
 0x939   :  { %v4124_v45 = vpop.f32.mrb[31].mxu1  ;;  %v5110_v55 = vadd.f32 %v3897_v35, %v2431_v44 }
 0x93b   :  { %v2561_v56 = vrot.slane %v5110_v55, %v4962_v58 }
 0x93d   :  { %v2197_v48 = vpop.f32.mrb[34].mxu0  ;;  %v2562_v63 = vcombine.high %v2561_v56, %v2561_v56  ;;  %v2569_v7 = vrot.slane %v2561_v56, %v4962_v58 }
 0x93e   :  { %v2281_v51 = vsel %vm276_vm3, %v2280_v46, %v2197_v48  ;;  %v4109_v52 = vpop.f32.mrb[35].mxu0  ;;  %v2907_v46 = vld [vmem:[%s5427_s10 + $0xf0] sm:$0xff] }
 0x93f   :  { %4118 = vmatmul.mubr.msk.f32.vlgmr.msra.gmra.mrb[36].mxu0 %vm1240_vm8, %v2281_v51  ;;  %v2576_v6 = vrot.slane %v2562_v63, %v4962_v58  ;;  %v3059_v24 = vrot.slane %v2569_v7, %v5009_v34 }
 0x940   :  { %4126 = vmatpush3.msra.mxu0 %v2439_v43  ;;  %4127 = vmatprep.mubr.msk.f32.mxu0 %vm1240_vm8, %v2435_v49 }
 0x941   :  { %4135 = vmatprep.subr.mxu0 %v4461_v47  ;;  %v3141_v37 = vrot.slane %v2576_v6, %v5009_v34 }
 0x943   :  { %4128 = vmatmul.mubr.msk.f32.vlgmr.msra.gmra.mrb[38].mxu0 %vm1240_vm8, %v2436_v54 }
 0x944   :  { %4137 = vmatprep.mubr.msk.f32.mxu0 %vm4462_vm6, %v4461_v47 }
 0xa12   :  { %v2350_v59 = vpop.f32.mrb[36].mxu0 }
 0xa13   :  { %v5115_v60 = vadd.f32 %v2350_v59, %v5061_v17  ;;  %v4119_v61 = vpop.f32.mrb[37].mxu0 }
 0xa16   :  { %v4129_v0 = vpop.f32.mrb[38].mxu0 }
 0xa17   :  { %v5117_v1 = vadd.f32 %v4129_v0, %v2443_v62  ;;  %v2517_v3 = vpop.f32.mrb[39].mxu0 }
 0xa18   :  { %v5119_v5 = vadd.f32 %v2517_v3, %v2443_v62 }
 0xa19   :  { %4136 = vmatpush3.xpose.msk.msra.mxu0 %vm1240_vm8, %v5117_v1 }
 0xa1a   :  { %4131 = vmatpush3.xpose.msk.msra.mxu1 %vm1240_vm8, %v5119_v5  ;;  %4145 = vmatprep.subr.mxu0 %v4461_v47 }
 0xa1b   :  { %4140 = vmatprep.subr.mxu1 %v4461_v47 }
 0xa1c   :  { %4138 = vmatmul.mubr.msk.f32.vlgmr.msra.gmra.mrb[40].mxu0 %vm1240_vm8, %v2576_v6 }
 0xa1d   :  { %4133 = vmatmul.mubr.msk.f32.vlgmr.msra.gmra.mrb[32].mxu1 %vm1240_vm8, %v2569_v7  ;;  %4147 = vmatprep.mubr.msk.f32.mxu0 %vm4462_vm6, %v4461_v47 }
 0xa1e   :  { %4142 = vmatprep.mubr.msk.f32.mxu1 %vm4462_vm6, %v4461_v47 }
 0xaef   :  { %v2723_v14 = vpop.f32.mrb[40].mxu0 }
 0xaf0   :  { %v2728_v15 = vmul.f32 0.35355338, %v2723_v14  ;;  %v2648_v17 = vpop.f32.mrb[32].mxu1  ;;  %v4139_v18 = vpop.f32.mrb[41].mxu0 }
 0xaf1   :  { %v2727_v20 = vmul.f32 0.35355338, %v2648_v17  ;;  %v4134_v21 = vpop.f32.mrb[33].mxu1 }
 0xaf2   :  { %v2732_v22 = vsel %vm2730_vm14, %v2728_v15, -1e+09 }
 0xaf3   :  { %v2736_v9 = vsel %vm1611_vm12, %v2732_v22, -inf  ;;  %v2731_v58 = vsel %vm5143_vm15, %v2727_v20, -1e+09 }
 0xaf4   :  { %2737 = vmax.xlane.f32.xlu0 %v2736_v9  ;;  %v2733_v23 = vsel %vm1611_vm12, %v2731_v58, -inf }
 0xaf5   :  { %2734 = vmax.xlane.f32.xlu1 %v2733_v23 }
 0xb06   :  { %2831 = vrot.lane.b32.xlu1 %v5117_v1, %s4464_s16 }
 0xb0a   :  { %3144 = vrot.lane.b32.xlu1 %v5117_v1, %s4466_s3 }
 0xb0e   :  { %3062 = vrot.lane.b32.xlu1 %v5119_v5, %s4466_s3 }
 0xb12   :  { %3060 = vrot.lane.b32.xlu1 %v3059_v24, %s4466_s3 }
 0xb81   :  { %v2738_v25 = vpop.xlane.xlu0 %2737 }
 0xb82   :  { %v2740_v26 = vsub.f32 %v2732_v22, %v2738_v25  ;;  %v2735_v27 = vpop.xlane.xlu1 %2734 }
 0xb83   :  { %v2739_v28 = vsub.f32 %v2731_v58, %v2735_v27 }
 0xb84   :  { %v2743_v29 = vmul.f32 1.442695, %v2740_v26  ;;  %v3875_v26 = vld [vmem:[%s5425_s8 + $0x20] ss:$0 sm:$0xff] }
 0xb85   :  { %v2741_v16 = vmul.f32 1.442695, %v2739_v28  ;;  %v3500_v28 = vld [vmem:[%s5427_s10 + $0xc0] sm:$0xff] }
 0xb86   :  { %4420 = vpow2.f32 %v2743_v29  ;;  %v2832_v30 = vpop.permute.xlu1 %2831 }
 0xb87   :  { %4146 = vmatpush3.msra.mxu0 %v2832_v30  ;;  %4422 = vpow2.f32 %v2741_v16  ;;  %v1225_v16 = vadd.f32 %v3875_v26, %v4957_v50  ;;  %v3492_v26 = vld [vmem:[%s5427_s10 + $0x80] sm:$0xff] }
 0xb88   :  { %4240 = vmatprep.subr.bf16.mxu0 %v4463_v53 }
 0xb89   :  { %vm1228_vm0 = vcmp.ge.f32.partialorder %v1225_v16, 0.0 }
 0xb8a   :  { %v3145_v48 = vpop.permute.xlu1 %3144 }
 0xb8e   :  { %v3063_v54 = vpop.permute.xlu1 %3062 }
 0xb90   :  { %v4421_v31 = vpop.eup %4420 }
 0xb91   :  { %v2748_v33 = vsel %vm1611_vm12, %v4421_v31, 0.0  ;;  %v4423_v2 = vpop.eup %4422 }
 0xb92   :  { %2749 = vadd.xlane.f32.xlu0 %v2748_v33  ;;  %v2745_v35 = vsel %vm1611_vm12, %v4423_v2, 0.0  ;;  %v3061_v0 = vpop.permute.xlu1 %3060 }
 0xb96   :  { %2746 = vadd.xlane.f32.xlu0 %v2745_v35  ;;  %v1229_v35 = vmul.f32 0.01, %v1225_v16 }
 0xbac   :  { %2755 = vrot.lane.b32.xlu0 %v5119_v5, %s4464_s16 }
 0xbb0   :  { %3142 = vrot.lane.b32.xlu0 %v3141_v37, %s4466_s3  ;;  %v1230_v37 = vsel %vm1228_vm0, %v1225_v16, %v1229_v35  ;;  %v3499_v35 = vld [vmem:[%s5427_s10 + $0xb8] sm:$0xff] }
 0xc1f   :  { %v2750_v4 = vpop.xlane.xlu0 %2749 }
 0xc20   :  { %4424 = vrcp.f32 %v2750_v4 }
 0xc23   :  { %v2747_v41 = vpop.xlane.xlu0 %2746 }
 0xc24   :  { %4426 = vrcp.f32 %v2747_v41 }
 0xc27   :  { %v2756_v38 = vpop.permute.xlu0 %2755 }
 0xc28   :  { %4141 = vmatpush3.msra.mxu1 %v2756_v38 }
 0xc29   :  { %4150 = vmatprep.subr.mxu1 %v4461_v47 }
 0xc2a   :  { %v4425_v42 = vpop.eup %4424 }
 0xc2b   :  { %v2754_v43 = vmul.f32 %v4425_v42, %v4421_v31  ;;  %v3143_v49 = vpop.permute.xlu0 %3142  ;;  %v4244_v31 = vpack.c.bf16 %v3501_v19, %v3500_v28  ;;  %v3494_v19 = vld [vmem:[%s5427_s10 + $0x90] sm:$0xff] }
 0xc2d   :  { %4148 = vmatmul.mubr.msk.f32.vlgmr.msra.gmra.mrb[42].mxu0 %vm1240_vm8, %v2754_v43 }
 0xc2e   :  { %v4427_v44 = vpop.eup %4426  ;;  %4242 = vmatpush3.bf16.msra.mxu0 %v4241_v12  ;;  %4159 = vmatprep.mubr.msk.f32.mxu0 %vm4462_vm6, %v4461_v47 }
 0xc2f   :  { %v2753_v45 = vmul.f32 %v4427_v44, %v4423_v2  ;;  %4167 = vmatprep.subr.mxu0 %v4461_v47 }
 0xc31   :  { %4143 = vmatmul.mubr.msk.f32.vlgmr.msra.gmra.mrb[34].mxu1 %vm1240_vm8, %v2753_v45  ;;  %4160 = vmatmul.mubr.msk.f32.vlgmr.msra.gmra.mrb[44].mxu0 %vm1154_vm10, %v5110_v55  ;;  %v1047_v45 = vsub.s32 1, %v4959_v57 }
 0xc32   :  { %4169 = vmatprep.mubr.msk.f32.mxu0 %vm4462_vm6, %v4461_v47  ;;  %4151 = vmatpush3.msra.mxu1 %v2907_v46  ;;  %v5248_v46 = vld [vmem:[%s5428_s11] ss:$8 sm:$0x3] }
 0xc33   :  { %4152 = vmatprep.mubr.msk.f32.mxu1 %vm4462_vm6, %v4461_v47  ;;  %4162 = vmatprep.subr.mxu1 %v4461_v47 }
 0xc37   :  { %4168 = vmatpush3.xpose.msk.msra.mxu0 %vm1240_vm8, %v3145_v48 }
 0xc38   :  { %4177 = vmatprep.subr.mxu0 %v4461_v47 }
 0xc3a   :  { %4170 = vmatmul.mubr.msk.f32.vlgmr.msra.gmra.mrb[46].mxu0 %vm1240_vm8, %v3143_v49  ;;  %v3476_v49 = vld [vmem:[%s5427_s10] sm:$0xff] }
 0xc3b   :  { %4179 = vmatprep.mubr.msk.f32.mxu0 %vm4462_vm6, %v4461_v47 }
 0xd00   :  { %v2903_v51 = vpop.f32.mrb[42].mxu0 }
 0xd01   :  { %v4149_v52 = vpop.f32.mrb[43].mxu0  ;;  %v2910_v55 = vrot.slane %v2903_v51, 7  ;;  %v3477_v51 = vld [vmem:[%s5427_s10 + $0x8] sm:$0xff] }
 0xd04   :  { %v2827_v56 = vpop.f32.mrb[34].mxu1  ;;  %v3052_v59 = vpop.f32.mrb[44].mxu0 }
 0xd05   :  { %v2911_v61 = vsel %vm276_vm3, %v2910_v55, %v2827_v56  ;;  %v4144_v62 = vpop.f32.mrb[35].mxu1  ;;  %v4161_v63 = vpop.f32.mrb[45].mxu0  ;;  %v4247_v55 = vpack.c.bf16 %v3477_v51, %v3476_v49  ;;  %v3668_v49 = vld [vmem:[%s5428_s11 + $0x58] sm:$0xff]  ;;  %v3670_v51 = vld [vmem:[%s5428_s11 + $0x68] sm:$0xff] }
 0xd06   :  { %4153 = vmatmul.mubr.msk.f32.vlgmr.msra.gmra.mrb[36].mxu1 %vm1240_vm8, %v2911_v61 }
 0xd07   :  { %4163 = vmatpush3.xpose.msk.msra.mxu1 %vm1240_vm8, %v3063_v54  ;;  %4164 = vmatprep.mubr.msk.f32.mxu1 %vm4462_vm6, %v4461_v47 }
 0xd08   :  { %4172 = vmatprep.subr.mxu1 %v4461_v47 }
 0xd0a   :  { %4165 = vmatmul.mubr.msk.f32.vlgmr.msra.gmra.mrb[38].mxu1 %vm1240_vm8, %v3061_v0 }
 0xd0b   :  { %4174 = vmatprep.mubr.msk.f32.mxu1 %vm4462_vm6, %v4461_v47 }
 0xd0d   :  { %v3216_v3 = vpop.f32.mrb[46].mxu0 }
 0xd0e   :  { %v3221_v6 = vmul.f32 0.35355338, %v3216_v3  ;;  %v4171_v7 = vpop.f32.mrb[47].mxu0  ;;  %v3480_v3 = vld [vmem:[%s5427_s10 + $0x20] sm:$0xff] }
 0xd10   :  { %v3223_v8 = vsel %vm2730_vm14, %v3221_v6, -1e+09  ;;  %v3481_v6 = vld [vmem:[%s5427_s10 + $0x28] sm:$0xff] }
 0xd11   :  { %v3227_v10 = vsel %vm1611_vm12, %v3223_v8, -inf  ;;  %v4253_v7 = vpack.c.bf16 %v3481_v6, %v3480_v3 }
 0xd12   :  { %3228 = vmax.xlane.f32.xlu0 %v3227_v10  ;;  %v3483_v10 = vld [vmem:[%s5427_s10 + $0x38] sm:$0xff] }
 0xd9f   :  { %v3229_v13 = vpop.xlane.xlu0 %3228 }
 0xda0   :  { %v3231_v14 = vsub.f32 %v3223_v8, %v3229_v13  ;;  %v3482_v8 = vld [vmem:[%s5427_s10 + $0x30] sm:$0xff] }
 0xda1   :  { %v4256_v13 = vpack.c.bf16 %v3483_v10, %v3482_v8 }
 0xda2   :  { %v3234_v15 = vmul.f32 1.442695, %v3231_v14  ;;  %v3484_v14 = vld [vmem:[%s5427_s10 + $0x40] sm:$0xff] }
 0xda4   :  { %4428 = vpow2.f32 %v3234_v15  ;;  %v3485_v15 = vld [vmem:[%s5427_s10 + $0x48] sm:$0xff] }
 0xdae   :  { %v4429_v17 = vpop.eup %4428 }
 0xdaf   :  { %v3239_v18 = vsel %vm1611_vm12, %v4429_v17, 0.0 }
 0xdb0   :  { %3240 = vadd.xlane.f32.xlu0 %v3239_v18  ;;  %v3486_v18 = vld [vmem:[%s5427_s10 + $0x50] sm:$0xff] }
 0xdd9   :  { %v2980_v20 = vpop.f32.mrb[36].mxu1 }
 0xdda   :  { %v5208_v21 = vadd.f32 %v3052_v59, %v2980_v20  ;;  %v4154_v22 = vpop.f32.mrb[37].mxu1  ;;  %v3478_v59 = vld [vmem:[%s5427_s10 + $0x10] sm:$0xff]  ;;  %v3487_v20 = vld [vmem:[%s5427_s10 + $0x58] sm:$0xff] }
 0xddb   :  { %v4262_v22 = vpack.c.bf16 %v3487_v20, %v3486_v18 }
 0xddd   :  { %v3134_v9 = vpop.f32.mrb[38].mxu1 }
 0xdde   :  { %v3220_v58 = vmul.f32 0.35355338, %v3134_v9  ;;  %v4166_v23 = vpop.f32.mrb[39].mxu1  ;;  %v3488_v9 = vld [vmem:[%s5427_s10 + $0x60] sm:$0xff] }
 0xde0   :  { %v3222_v11 = vsel %vm5143_vm15, %v3220_v58, -1e+09  ;;  %v3489_v58 = vld [vmem:[%s5427_s10 + $0x68] sm:$0xff] }
 0xde1   :  { %v3224_v24 = vsel %vm1611_vm12, %v3222_v11, -inf  ;;  %v4265_v23 = vpack.c.bf16 %v3489_v58, %v3488_v9  ;;  %v4468_v9 = vmov 1983009808  }
 0xde2   :  { %3225 = vmax.xlane.f32.xlu1 %v3224_v24  ;;  %v3491_v24 = vld [vmem:[%s5427_s10 + $0x78] sm:$0xff]  ;;  %v3772_v58 = vunpack.c.l.s4 %v4468_v9 }
 0xdf3   :  { %3322 = vrot.lane.b32.xlu1 %v5117_v1, %s4467_s28 }
 0xe3d   :  { %v3241_v25 = vpop.xlane.xlu0 %3240 }
 0xe3e   :  { %4430 = vrcp.f32 %v3241_v25 }
 0xe48   :  { %v4431_v29 = vpop.eup %4430 }
 0xe49   :  { %v3245_v33 = vmul.f32 %v4431_v29, %v4429_v17  ;;  %v4259_v17 = vpack.c.bf16 %v3485_v15, %v3484_v14  ;;  %v3495_v29 = vld [vmem:[%s5427_s10 + $0x98] sm:$0xff]  ;;  %v3919_v15 = vld [vmem:[%s5427_s10 + $0x110] ss:$0 sm:$0xff] }
 0xe4a   :  { %v4274_v16 = vpack.c.bf16 %v3495_v29, %v3494_v19 }
 0xe6f   :  { %v3226_v27 = vpop.xlane.xlu1 %3225 }
 0xe70   :  { %v3230_v30 = vsub.f32 %v3222_v11, %v3226_v27  ;;  %v3490_v11 = vld [vmem:[%s5427_s10 + $0x70] sm:$0xff]  ;;  %v3493_v27 = vld [vmem:[%s5427_s10 + $0x88] sm:$0xff] }
 0xe71   :  { %v4268_v25 = vpack.c.bf16 %v3491_v24, %v3490_v11  ;;  %v4271_v28 = vpack.c.bf16 %v3493_v27, %v3492_v26 }
 0xe72   :  { %v3232_v1 = vmul.f32 1.442695, %v3230_v30  ;;  %v3496_v30 = vld [vmem:[%s5427_s10 + $0xa0] sm:$0xff] }
 0xe73   :  { %v3323_v2 = vpop.permute.xlu1 %3322 }
 0xe74   :  { %4432 = vpow2.f32 %v3232_v1  ;;  %4178 = vmatpush3.msra.mxu0 %v3323_v2  ;;  %v3497_v1 = vld [vmem:[%s5427_s10 + $0xa8] sm:$0xff]  ;;  %v3498_v2 = vld [vmem:[%s5427_s10 + $0xb0] sm:$0xff] }
 0xe75   :  { %4180 = vmatmul.mubr.msk.f32.vlgmr.msra.gmra.mrb[48].mxu0 %vm1240_vm8, %v3245_v33  ;;  %4243 = vmatprep.subr.bf16.mxu0 %v4463_v53  ;;  %v4277_v33 = vpack.c.bf16 %v3497_v1, %v3496_v30 }
 0xe76   :  { %4245 = vmatpush3.bf16.msra.mxu0 %v4244_v31  ;;  %4191 = vmatprep.mubr.msk.f32.mxu0 %vm4462_vm6, %v4461_v47  ;;  %v1044_v31 = vrot.slane %v5248_v46, %v5009_v34 }
 0xe79   :  { %4192 = vmatmul.mubr.msk.f32.vlgmr.msra.gmra.mrb[50].mxu0 %vm1154_vm10, %v1230_v37  ;;  %v1051_v37 = vadd.f32 %v1044_v31, %v4917_v32  ;;  %v3659_v32 = vld [vmem:[%s5428_s11 + $0x10] sm:$0xff] }
 0xe7a   :  { %3755 = vmatprep.mubr.f32.mxu0 %v4461_v47 }
 0xe7b   :  { %vm1053_vm2 = vcmp.ge.f32.partialorder %v1051_v37, 0.0 }
 0xe7e   :  { %v4433_v50 = vpop.eup %4432 }
 0xe7f   :  { %v3236_v4 = vsel %vm1611_vm12, %v4433_v50, 0.0 }
 0xe80   :  { %3237 = vadd.xlane.f32.xlu0 %v3236_v4  ;;  %v1055_v4 = vmul.f32 0.01, %v1051_v37 }
 0xe96   :  { %3246 = vrot.lane.b32.xlu0 %v5119_v5, %s4467_s28  ;;  %v3398_v5 = vld [vmem:[%s5427_s10 + $0xf8] sm:$0xff] }
 0xf0d   :  { %v3238_v41 = vpop.xlane.xlu0 %3237 }
 0xf0e   :  { %4434 = vrcp.f32 %v3238_v41  ;;  %v1057_v41 = vsel %vm1053_vm2, %v1051_v37, %v1055_v4 }
 0xf11   :  { %v3247_v38 = vpop.permute.xlu0 %3246 }
 0xf12   :  { %4173 = vmatpush3.msra.mxu1 %v3247_v38  ;;  %v3660_v38 = vld [vmem:[%s5428_s11 + $0x18] sm:$0xff] }
 0xf13   :  { %4182 = vmatprep.subr.mxu1 %v4461_v47 }
 0xf18   :  { %v4435_v39 = vpop.eup %4434 }
 0xf19   :  { %v3244_v40 = vmul.f32 %v4435_v39, %v4433_v50  ;;  %v4280_v50 = vpack.c.bf16 %v3499_v35, %v3498_v2  ;;  %v3662_v39 = vld [vmem:[%s5428_s11 + $0x28] sm:$0xff] }
 0xf1b   :  { %4175 = vmatmul.mubr.msk.f32.vlgmr.msra.gmra.mrb[40].mxu1 %vm1240_vm8, %v3244_v40  ;;  %v4282_v40 = vpack.c.bf16 %v3662_v39, %v3660_v38 }
 0xf1c   :  { %4184 = vmatprep.mubr.msk.f32.mxu1 %vm4462_vm6, %v4461_v47  ;;  %4183 = vmatpush3.msra.mxu1 %v3398_v5  ;;  %v1048_v47 = vrot.slane %v5248_v46, %v1047_v45  ;;  %v3663_v46 = vld [vmem:[%s5428_s11 + $0x30] sm:$0xff] }
 0xf1d   :  { %4246 = vmatprep.subr.bf16.mxu1 %v4463_v53  ;;  %4283 = vmatprep.subr.bf16.mxu0 %v4282_v40 }
 0xf1e   :  { %v1052_v48 = vadd.f32 %v1048_v47, %v4922_v36  ;;  %v3479_v36 = vld [vmem:[%s5427_s10 + $0x18] sm:$0xff]  ;;  %v3665_v47 = vld [vmem:[%s5428_s11 + $0x40] sm:$0xff]  ;;  %s4469_s10 = smov [#allocation2]  }
 0xf1f   :  { %v4250_v0 = vpack.c.bf16 %v3479_v36, %v3478_v59  ;;  %v3672_v59 = vld [vmem:[%s5428_s11 + $0x78] sm:$0xff]  ;;  %v3674_v36 = vld [vmem:[%s5428_s11 + $0x88] sm:$0xff] }
 0xf20   :  { %v1056_v52 = vmul.f32 0.01, %v1052_v48  ;;  %vm1054_vm1 = vcmp.ge.f32.partialorder %v1052_v48, 0.0 }
 0xf22   :  { %v1058_v63 = vsel %vm1054_vm1, %v1052_v48, %v1056_v52  ;;  %v4288_v48 = vpack.c.bf16 %v3665_v47, %v3663_v46  ;;  %v4290_v52 = vpack.c.bf16 %v3670_v51, %v3668_v49 }
 0xf48   :  { %v3394_v42 = vpop.f32.mrb[48].mxu0 }
 0xf49   :  { %v4181_v12 = vpop.f32.mrb[49].mxu0  ;;  %v3401_v54 = vrot.slane %v3394_v42, 7 }
 0xf4a   :  { %v3664_v12 = vld [vmem:[%s5428_s11 + $0x38] sm:$0xff] }
 0xf4c   :  { %v5238_v43 = vpop.f32.mrb[50].mxu0 }
 0xf4d   :  { %v4193_v44 = vpop.f32.mrb[51].mxu0 }
 0xf4e   :  { %v3666_v44 = vld [vmem:[%s5428_s11 + $0x48] sm:$0xff] }
 0xf4f   :  { %v4286_v5 = vpack.c.bf16 %v3666_v44, %v3664_v12 }
 0xfee   :  { %v3318_v56 = vpop.f32.mrb[40].mxu1 }
 0xfef   :  { %v3402_v61 = vsel %vm276_vm3, %v3401_v54, %v3318_v56  ;;  %v4176_v62 = vpop.f32.mrb[41].mxu1  ;;  %v3667_v54 = vld [vmem:[%s5428_s11 + $0x50] sm:$0xff] }
 0xff0   :  { %4185 = vmatmul.mubr.msk.f32.vlgmr.msra.gmra.mrb[42].mxu1 %vm1240_vm8, %v3402_v61  ;;  %v4294_v61 = vpack.c.bf16 %v3674_v36, %v3672_v59  ;;  %v3671_v62 = vld [vmem:[%s5428_s11 + $0x70] sm:$0xff] }
 0xff1   :  { %4248 = vmatpush1.bf16.msra.mxu1 %v4247_v55  ;;  %3918 = vmatprep.mubr.msk.f32.mxu1 %vm319_vm4, %v1058_v63  ;;  %v3669_v55 = vld [vmem:[%s5428_s11 + $0x60] sm:$0xff] }
 0xff2   :  { %4249 = vmatprep.subr.bf16.mxu1 %v4463_v53  ;;  %v4292_v56 = vpack.c.bf16 %v3669_v55, %v3667_v54  ;;  %v3673_v63 = vld [vmem:[%s5428_s11 + $0x80] sm:$0xff] }
 0xff5   :  { %4251 = vmatpush1.bf16.msra.mxu1 %v4250_v0  ;;  %v4296_v0 = vpack.c.bf16 %v3673_v63, %v3671_v62 }
 0xff6   :  { %4252 = vmatprep.subr.bf16.mxu1 %v4463_v53 }
 0xff9   :  { %4254 = vmatpush1.bf16.msra.mxu1 %v4253_v7 }
 0xffa   :  { %4255 = vmatprep.subr.bf16.mxu1 %v4463_v53 }
 0xffd   :  { %4257 = vmatpush1.bf16.msra.mxu1 %v4256_v13 }
 0xffe   :  { %4258 = vmatprep.subr.bf16.mxu1 %v4463_v53 }
0x1001   :  { %4260 = vmatpush1.bf16.msra.mxu1 %v4259_v17 }
0x1002   :  { %4261 = vmatprep.subr.bf16.mxu1 %v4463_v53 }
0x1005   :  { %4263 = vmatpush1.bf16.msra.mxu1 %v4262_v22 }
0x1006   :  { %4264 = vmatprep.subr.bf16.mxu1 %v4463_v53 }
0x1009   :  { %4266 = vmatpush1.bf16.msra.mxu1 %v4265_v23 }
0x100a   :  { %4267 = vmatprep.subr.bf16.mxu1 %v4463_v53 }
0x100d   :  { %4269 = vmatpush1.bf16.msra.mxu1 %v4268_v25  ;;  %v3773_v25 = vunpack.c.0.s8 %v3772_v58 }
0x100e   :  { %4270 = vmatprep.subr.bf16.mxu1 %v4463_v53 }
0x100f   :  { %v3776_v29 = vsub.s32 %v3773_v25, %v4959_v57 }
0x1011   :  { %4272 = vmatpush1.bf16.msra.mxu1 %v4271_v28 }
0x1012   :  { %4273 = vmatprep.subr.bf16.mxu1 %v4463_v53 }
0x1015   :  { %4275 = vmatpush1.bf16.msra.mxu1 %v4274_v16 }
0x1016   :  { %4276 = vmatprep.subr.bf16.mxu1 %v4463_v53 }
0x1019   :  { %4278 = vmatpush1.bf16.msra.mxu1 %v4277_v33 }
0x101a   :  { %4279 = vmatprep.subr.bf16.mxu1 %v4463_v53  ;;  %v3661_v53 = vld [vmem:[%s5428_s11 + $0x20] sm:$0xff] }
0x101b   :  { %v4284_v42 = vpack.c.bf16 %v3661_v53, %v3659_v32 }
0x101d   :  { %4281 = vmatpush1.bf16.msra.mxu1 %v4280_v50  ;;  %4285 = vmatpush1.bf16.msra.mxu0 %v4284_v42 }
0x101e   :  { %4287 = vmatprep.subr.bf16.mxu0 %v4286_v5 }
0x1020   :  { %3643 = vmatmul.mubr.f32.vlgmr.msra.gmra.mrb[44].mxu1 %v1057_v41 }
0x1021   :  { %4289 = vmatpush1.bf16.msra.mxu0 %v4288_v48 }
0x1022   :  { %4291 = vmatprep.subr.bf16.mxu0 %v4290_v52 }
0x1025   :  { %4293 = vmatpush1.bf16.msra.mxu0 %v4292_v56 }
0x1026   :  { %4295 = vmatprep.subr.bf16.mxu0 %v4294_v61 }
0x1029   :  { %4297 = vmatpush1.bf16.msra.mxu0 %v4296_v0 }
0x10c3   :  { %v3471_v3 = vpop.f32.mrb[42].mxu1 }
0x10c4   :  { %v3475_v6 = vadd.f32 %v3471_v3, %v5208_v21  ;;  %v4186_v7 = vpop.f32.mrb[43].mxu1  ;;  %v3920_v21 = vld [vmem:[%s5428_s11 + $0x90] ss:$8 sm:$0x3]  ;;  %s3789_s11 = sshll.u32 %s4469_s10, 4  ;;  %s3790_s11 = int_to_ptr.vmem [resolvable:$true] %s3789_s11 }
0x10c5   :  { %s4436_s29 = scalar_lea.vmem %s3790_s11, 64  ;;  %p4441_p1 = scmp.lt.s32.totalorder %s3790_s11, %s3790_s11 }
0x10c6   :  { %p4437_p0 = scmp.ne.s32.totalorder %s3790_s11, %s4436_s29  ;;  %p4442_p2 = scmp.lt.s32.totalorder %s4436_s29, %s4436_s29 }
0x10c8   :  { %p4443_p3 = por %p4442_p2, %p4441_p1 }
0x10ca   :  { %p4444_p4 = pnand %p4443_p3, %p4437_p0 }
0x10f3   :  { %v3644_v8 = vpop.f32.mrb[44].mxu1 }
0x10f4   :  { %v3645_v10 = vadd.f32 %v3644_v8, %v5238_v43  ;;  %v3646_v13 = vpop.f32.mrb[45].mxu1  ;;  %v3681_v43 = vrot.slane %v3920_v21, %v5009_v34 }
0x10f6   :  { %v3648_v14 = vadd.f32 %v3645_v10, %v5115_v60  ;;  %v3685_v60 = vrot.slane %v3920_v21, %v1047_v45 }
0x10f8   :  { %v3649_v17 = vadd.f32 %v3648_v14, %v3475_v6 }
0x10fa   :  { %v3655_v18 = vadd.f32 %v3919_v15, %v3649_v17 }
0x10fc   :  { %vm3656_vm3 = vcmp.ge.f32.partialorder %v3655_v18, 0.0  ;;  %v3657_v20 = vmul.f32 0.01, %v3655_v18 }
0x10fe   :  { %v3658_v22 = vsel %vm3656_vm3, %v3655_v18, %v3657_v20 }
0x10ff   :  { %3921 = vmatmul.mubr.msk.f32.vlgmr.msra.gmra.mrb[52].mxu0 %vm319_vm4, %v3658_v22  ;;  %vm3779_vm4 = vcmask 1041408  }
0x1100   :  { %vm3781_vm8 = vmor %vm3780_vm7, %vm3779_vm4 }
0x11d2   :  { %v3757_v23 = vpop.f32.mrb[52].mxu0 }
0x11d3   :  { %v3758_v11 = vadd.f32 %v3757_v23, %v3681_v43  ;;  %v3759_v24 = vpop.f32.mrb[53].mxu0 }
0x11d4   :  { %v3760_v26 = vadd.f32 %v3759_v24, %v3685_v60 }
0x11d5   :  { %vm3762_vm5 = vcmp.ge.f32.partialorder %v3758_v11, 0.0  ;;  %v3764_v27 = vmul.f32 0.01, %v3758_v11 }
0x11d6   :  { %vm3763_vm6 = vcmp.ge.f32.partialorder %v3760_v26, 0.0  ;;  %v3765_v28 = vmul.f32 0.01, %v3760_v26 }
0x11d7   :  { %v3766_v19 = vsel %vm3762_vm5, %v3758_v11, %v3764_v27 }
0x11d8   :  { %v3767_v34 = vsel %vm3763_vm6, %v3760_v26, %v3765_v28 }
0x11d9   :  { %v3770_v16 = vcombine.low %v3766_v19, %v3767_v34 }
0x11db   :  { %v3777_v45 = vrot.slane %v3770_v16, %v3776_v29 }
0x11dd   :  { %3782 = vst.msk [vmem:[#allocation2] sm:$0xf] %vm3781_vm8, %v3777_v45 }
0x11de   :  { %4447 = shalt.err (!%p4444_p4)
}
0x11df   :  { %s4448_s1 = scalar_lea.hbm %s5429_s12, 64 }
0x11e0   :  { %p4449_p5 = scmp.ne.s32.totalorder %s5429_s12, %s4448_s1  ;;  %p4452_p6 = scmp.lt.u32.totalorder %s4448_s1, %s5429_s12 }
0x11e2   :  { %p4454_p7 = pnand %p4452_p6, %p4449_p5 }
0x11e4   :  { %4457 = shalt.err (!%p4454_p7)
}
0x11e5   :  { %3792 = dma.vmem_to_hbm [thread:$0]  %s3790_s11, 64, %s5429_s12, [#allocation3]  }
0x11e6   :  { %4458 = dma.done.wait [#allocation3], 64  }
0x11e7   :  { %4459 = vsyncadd [#allocation3], 4294967232 }
0x11e8   :  { %3796 = vsyncpa [#allocation3], 1 }

</bundles_post_ra>
